<compile_context>
chip_gen: v5e
topology: v5e:2x2
jax: 0.10.0
libtpu: 0.0.40
codegen_flags: <defaults>
</compile_context>

<pallas_src>
import functools
import math

import jax
import jax.numpy as jnp
from jax import lax
from jax.experimental import pallas as pl
from jax.experimental.pallas import tpu as pltpu

CORR_WINDOW = 60          # self.correlation_window
VOL_WINDOW = 30           # window used by the regime penalty
REGIME_SENS = 0.1         # self.regime_sensitivity
TARGET_VOL = 0.15 / math.sqrt(252.0)
_HIGHEST = lax.Precision.HIGHEST


def _risk_kernel(pos_ref, hist_ref, pret_ref, out_ref, *, L, N, B):
    pos = pos_ref[...]        # (B, N) f32
    hist = hist_ref[...]      # (L, N) f32

    # ---- selector matmul: full / 30d / 60d column sums of hist and hist^2 ----
    # (pushes all axis-0 (sublane) reductions onto the otherwise idle MXU)
    sr = lax.broadcasted_iota(jnp.int32, (8, L), 0)
    sc = lax.broadcasted_iota(jnp.int32, (8, L), 1)
    sel = jnp.where(
        (sr == 0)
        | ((sr == 1) & (sc >= L - VOL_WINDOW))
        | ((sr == 2) & (sc >= L - CORR_WINDOW)),
        1.0, 0.0)                                                   # (8, L)
    hist2 = hist * hist
    dims_row = (((1,), (0,)), ((), ()))
    sums = lax.dot_general(sel, hist, dims_row,
                           precision=_HIGHEST,
                           preferred_element_type=jnp.float32)      # (8, N)
    sqsums = lax.dot_general(sel, hist2, dims_row,
                             precision=_HIGHEST,
                             preferred_element_type=jnp.float32)    # (8, N)

    # ---- portfolio variance: w^T cov w == ||Xc w||^2 / (W-1) -----------------
    # (vol / corrcoef normalisation cancels exactly; no N x N Gram matrix)
    mu = sums[2:3, :] * (1.0 / CORR_WINDOW)                          # (1, N)
    row = lax.broadcasted_iota(jnp.int32, (L, N), 0)
    xc = jnp.where(row >= L - CORR_WINDOW, hist - mu, 0.0)           # (L, N)
    z = lax.dot_general(xc, pos, (((1,), (1,)), ((), ())),
                        precision=_HIGHEST,
                        preferred_element_type=jnp.float32)          # (L, B)
    ones_row = sel[0:1, :]                                           # (1, L)
    pvar = lax.dot_general(ones_row, z * z, dims_row,
                           precision=_HIGHEST,
                           preferred_element_type=jnp.float32)
    pvar = pvar * (1.0 / (CORR_WINDOW - 1.0))                        # (1, B)
    pvol = jnp.sqrt(pvar + 1e-8)

    # ---- 5% VaR penalty: in-kernel rank select (no wrapper sort) -------------
    if B > 20:  # static branch (B is a trace-time constant), mirrors numel() > 20
        pret = pret_ref[...]                                         # (1, B)
        k = int(0.05 * B)
        bi = lax.broadcasted_iota(jnp.int32, (B, B), 0)
        bj = lax.broadcasted_iota(jnp.int32, (B, B), 1)
        eye = jnp.where(bi == bj, 1.0, 0.0)
        # Column view of the returns via the MXU instead of an XLU transpose.
        r_col = lax.dot_general(eye, pret, (((1,), (1,)), ((), ())),
                                precision=_HIGHEST,
                                preferred_element_type=jnp.float32)  # (B, 1)
        # sorted(r)[k] == min{ r_i : #{j : r_j <= r_i} >= k+1 } (tie robust)
        cnt_le = jnp.sum((pret <= r_col).astype(jnp.float32),
                         axis=1, keepdims=True)                      # (B, 1)
        cand = jnp.where(cnt_le >= float(k + 1), r_col, 3.0e38)
        var_5pct = jnp.min(cand)
        var_penalty = jnp.maximum(-var_5pct - 0.02, 0.0) * 10.0
    else:
        var_penalty = jnp.float32(0.0)

    # ---- concentration / volatility penalties --------------------------------
    hhi = jnp.sum(pos * pos) * (1.0 / B)
    concentration_penalty = jnp.maximum(hhi - 0.01, 0.0) * 15.0
    # sqrt(pvar) (not pvol = sqrt(pvar + 1e-8)) kept for exact parity with the
    # torch module; it is one extra EUP op over a single (1, B) vreg.
    vol_penalty = jnp.sum(jnp.maximum(jnp.sqrt(pvar) - TARGET_VOL, 0.0)) * (5.0 / B)
    risk_total = var_penalty + concentration_penalty + vol_penalty

    # ---- regime penalties via sum / sum-of-squares identities ----------------
    nr = float(VOL_WINDOW * N)
    nh = float((L - VOL_WINDOW) * N)
    s1 = jnp.sum(sums[0:1, :])
    s1r = jnp.sum(sums[1:2, :])
    s2 = jnp.sum(sqsums[0:1, :])
    s2r = jnp.sum(sqsums[1:2, :])
    rmu = s1r * (1.0 / nr)
    rvar = jnp.maximum(s2r - nr * rmu * rmu, 0.0) * (1.0 / (nr - 1.0))
    hmu = (s1 - s1r) * (1.0 / nh)
    hvar = jnp.maximum((s2 - s2r) - nh * hmu * hmu, 0.0) * (1.0 / (nh - 1.0))
    rvol = jnp.sqrt(rvar)
    hvol = jnp.sqrt(hvar)
    vol_regime_change = jnp.abs(rvol - hvol) / (hvol + 1e-8)
    regime_penalty = vol_regime_change * REGIME_SENS
    risk_penalty = risk_total + regime_penalty

    # ---- single coalesced output tile: rows = [pvar, pvol, packed scalars] ---
    cidx = lax.broadcasted_iota(jnp.int32, (1, B), 1)
    p01 = (jnp.where(cidx == 0, var_penalty, 0.0)
           + jnp.where(cidx == 1, concentration_penalty, 0.0))
    p23 = (jnp.where(cidx == 2, vol_penalty, 0.0)
           + jnp.where(cidx == 3, risk_total, 0.0))
    p45 = (jnp.where(cidx == 4, regime_penalty, 0.0)
           + jnp.where(cidx == 5, vol_regime_change, 0.0))
    # torch dict merge: the regime 'total_penalty' overwrites the risk one.
    p67 = (jnp.where(cidx == 6, regime_penalty, 0.0)
           + jnp.where(cidx == 7, risk_penalty, 0.0))
    scal_row = (p01 + p23) + (p45 + p67)          # balanced tree, depth ~4
    ridx = lax.broadcasted_iota(jnp.int32, (3, B), 0)
    out_ref[...] = jnp.where(ridx == 0, pvar,
                             jnp.where(ridx == 1, pvol, scal_row))


def multi_asset_risk_model(positions, returns_history, portfolio_returns):
    B, N = positions.shape
    L = returns_history.shape[0]
    # TODO(synk): the lookback < correlation_window fallback of the torch module
    # (scalar mean(sum(pos^2)) variance, different output shapes) is not implemented.
    assert L >= CORR_WINDOW and L > VOL_WINDOW and B >= 8

    positions = positions.astype(jnp.float32)
    returns_history = returns_history.astype(jnp.float32)
    pret = portfolio_returns.astype(jnp.float32).reshape(1, B)

    kernel = functools.partial(_risk_kernel, L=L, N=N, B=B)
    vmem = pl.BlockSpec(memory_space=pltpu.MemorySpace.VMEM)
    out = pl.pallas_call(
        kernel,
        out_shape=jax.ShapeDtypeStruct((3, B), jnp.float32),
        in_specs=[vmem, vmem, vmem],
        out_specs=vmem,
    )(positions, returns_history, pret)

    pvar = out[0]
    pvol = out[1]
    s = out[2]
    return {
        'risk_penalty': s[7],
        'portfolio_variance': pvar,
        'portfolio_volatility': pvol,
        'var_penalty': s[0],
        'concentration_penalty': s[1],
        'volatility_penalty': s[2],
        'regime_penalty': s[4],
        'vol_regime_change': s[5],
        # In the torch dict merge the regime 'total_penalty' overwrites the risk one.
        'total_penalty': s[6],
    }


def reference(positions, returns_history, portfolio_returns):
    """Plain-JAX mirror of the PyTorch forward (sanity check)."""
    recent = returns_history[-CORR_WINDOW:]
    corr = jnp.corrcoef(recent.T)
    vol = jnp.std(recent, axis=0, ddof=1)
    cov = vol[None, :] * corr * vol[:, None]
    pvar = jnp.einsum('bi,ij,bj->b', positions, cov, positions)
    B = portfolio_returns.shape[0]
    if B > 20:
        var_5pct = jnp.sort(portfolio_returns)[int(0.05 * B)]
        var_penalty = jnp.maximum(-var_5pct - 0.02, 0.0) * 10.0
    else:
        var_penalty = jnp.float32(0.0)
    hhi = jnp.mean(jnp.sum(positions ** 2, axis=1))
    conc = jnp.maximum(hhi - 0.01, 0.0) * 15.0
    volp = jnp.mean(jnp.maximum(jnp.sqrt(pvar) - TARGET_VOL, 0.0)) * 5.0
    risk_total = var_penalty + conc + volp
    rvol = jnp.std(returns_history[-VOL_WINDOW:], ddof=1)
    hvol = jnp.std(returns_history[:-VOL_WINDOW], ddof=1)
    vrc = jnp.abs(rvol - hvol) / (hvol + 1e-8)
    regime = vrc * REGIME_SENS
    return {'risk_penalty': risk_total + regime,
            'portfolio_variance': pvar,
            'portfolio_volatility': jnp.sqrt(pvar + 1e-8),
            'var_penalty': var_penalty,
            'concentration_penalty': conc,
            'volatility_penalty': volp,
            'regime_penalty': regime,
            'vol_regime_change': vrc,
            'total_penalty': regime}


if __name__ == "__main__":
    key = jax.random.PRNGKey(0)
    k1, k2, k3 = jax.random.split(key, 3)
    B, N, L = 32, 128, 64          # batch>20 and lookback>=60 exercise all branches
    positions = jax.random.normal(k1, (B, N), jnp.float32) * 0.01
    returns_history = jax.random.normal(k2, (L, N), jnp.float32) * 0.01
    portfolio_returns = jax.random.normal(k3, (B,), jnp.float32) * 0.02

    out = multi_asset_risk_model(positions, returns_history, portfolio_returns)
    out = jax.block_until_ready(out)

    # Reference at full f32 matmul precision so the tightened tolerance is fair.
    with jax.default_matmul_precision('highest'):
        ref = reference(positions, returns_history, portfolio_returns)

    for name in ['var_penalty', 'concentration_penalty', 'volatility_penalty',
                 'regime_penalty', 'vol_regime_change', 'risk_penalty', 'total_penalty']:
        assert jnp.allclose(out[name], ref[name], rtol=1e-3, atol=1e-6), name
    assert jnp.allclose(out['portfolio_variance'], ref['portfolio_variance'],
                        rtol=1e-4, atol=1e-12), 'portfolio_variance'
    assert jnp.allclose(out['portfolio_volatility'], ref['portfolio_volatility'],
                        rtol=1e-4, atol=1e-12), 'portfolio_volatility'
    assert all(bool(jnp.all(jnp.isfinite(v))) for v in jax.tree_util.tree_leaves(out))

    print("KERNEL_OK")
</pallas_src>

<mosaic_0001>
module attributes {stable_mosaic.version = 11 : i64} {
  func.func @_risk_kernel(%arg0: memref<32x128xf32, #tpu.memory_space<vmem>>, %arg1: memref<64x128xf32, #tpu.memory_space<vmem>>, %arg2: memref<1x32xf32, #tpu.memory_space<vmem>>, %arg3: memref<3x32xf32, #tpu.memory_space<vmem>>) attributes {dimension_semantics = [], scalar_prefetch = 0 : i64, scratch_operands = 0 : i64, tpu.core_type = #tpu.core_type<tc>} {
    %c0 = arith.constant 0 : index
    %c0_0 = arith.constant 0 : index
    %0 = vector.load %arg0[%c0, %c0_0] : memref<32x128xf32, #tpu.memory_space<vmem>>, vector<32x128xf32>
    %c0_1 = arith.constant 0 : index
    %c0_2 = arith.constant 0 : index
    %1 = vector.load %arg1[%c0_1, %c0_2] : memref<64x128xf32, #tpu.memory_space<vmem>>, vector<64x128xf32>
    %2 = tpu.iota {dimensions = array<i32: 0>} : vector<8x64xi32>
    %3 = tpu.iota {dimensions = array<i32: 1>} : vector<8x64xi32>
    %c0_i32 = arith.constant 0 : i32
    %4 = vector.broadcast %c0_i32 : i32 to vector<8x64xi32>
    %5 = arith.cmpi eq, %2, %4 : vector<8x64xi32>
    %c1_i32 = arith.constant 1 : i32
    %6 = vector.broadcast %c1_i32 : i32 to vector<8x64xi32>
    %7 = arith.cmpi eq, %2, %6 : vector<8x64xi32>
    %c34_i32 = arith.constant 34 : i32
    %8 = vector.broadcast %c34_i32 : i32 to vector<8x64xi32>
    %9 = arith.cmpi sge, %3, %8 : vector<8x64xi32>
    %10 = arith.andi %7, %9 : vector<8x64xi1>
    %11 = arith.ori %5, %10 : vector<8x64xi1>
    %c2_i32 = arith.constant 2 : i32
    %12 = vector.broadcast %c2_i32 : i32 to vector<8x64xi32>
    %13 = arith.cmpi eq, %2, %12 : vector<8x64xi32>
    %c4_i32 = arith.constant 4 : i32
    %14 = vector.broadcast %c4_i32 : i32 to vector<8x64xi32>
    %15 = arith.cmpi sge, %3, %14 : vector<8x64xi32>
    %16 = arith.andi %13, %15 : vector<8x64xi1>
    %17 = arith.ori %11, %16 : vector<8x64xi1>
    %cst = arith.constant 1.000000e+00 : f32
    %cst_3 = arith.constant 0.000000e+00 : f32
    %18 = vector.broadcast %cst : f32 to vector<8x64xf32>
    %19 = vector.broadcast %cst_3 : f32 to vector<8x64xf32>
    %20 = arith.select %17, %18, %19 : vector<8x64xi1>, vector<8x64xf32>
    %21 = arith.mulf %1, %1 : vector<64x128xf32>
    %cst_4 = arith.constant dense<0.000000e+00> : vector<8x128xf32>
    %22 = tpu.matmul %20, %1, %cst_4 {dimension_numbers = #tpu.dot_dimension_numbers<[1], [0], [0], [1], [0, 0, 1, 1], [], []>, precision = #tpu.contract_precision<fp32>} : vector<8x64xf32>, vector<64x128xf32>, vector<8x128xf32> -> vector<8x128xf32>
    %cst_5 = arith.constant dense<0.000000e+00> : vector<8x128xf32>
    %23 = tpu.matmul %20, %21, %cst_5 {dimension_numbers = #tpu.dot_dimension_numbers<[1], [0], [0], [1], [0, 0, 1, 1], [], []>, precision = #tpu.contract_precision<fp32>} : vector<8x64xf32>, vector<64x128xf32>, vector<8x128xf32> -> vector<8x128xf32>
    %24 = vector.extract_strided_slice %22 {offsets = [2, 0], sizes = [1, 128], strides = [1, 1]} : vector<8x128xf32> to vector<1x128xf32>
    %cst_6 = arith.constant 0.0166666675 : f32
    %25 = vector.broadcast %cst_6 : f32 to vector<1x128xf32>
    %26 = arith.mulf %24, %25 : vector<1x128xf32>
    %27 = tpu.iota {dimensions = array<i32: 0>} : vector<64x128xi32>
    %c4_i32_7 = arith.constant 4 : i32
    %28 = vector.broadcast %c4_i32_7 : i32 to vector<64x128xi32>
    %29 = arith.cmpi sge, %27, %28 : vector<64x128xi32>
    %30 = vector.broadcast %26 : vector<1x128xf32> to vector<64x128xf32>
    %31 = arith.subf %1, %30 : vector<64x128xf32>
    %cst_8 = arith.constant 0.000000e+00 : f32
    %32 = vector.broadcast %cst_8 : f32 to vector<64x128xf32>
    %33 = arith.select %29, %31, %32 : vector<64x128xi1>, vector<64x128xf32>
    %cst_9 = arith.constant dense<0.000000e+00> : vector<64x32xf32>
    %34 = tpu.matmul %33, %0, %cst_9 {dimension_numbers = #tpu.dot_dimension_numbers<[1], [1], [0], [0], [0, 0, 1, 0], [], []>, precision = #tpu.contract_precision<fp32>} : vector<64x128xf32>, vector<32x128xf32>, vector<64x32xf32> -> vector<64x32xf32>
    %35 = vector.extract_strided_slice %20 {offsets = [0, 0], sizes = [1, 64], strides = [1, 1]} : vector<8x64xf32> to vector<1x64xf32>
    %36 = arith.mulf %34, %34 : vector<64x32xf32>
    %cst_10 = arith.constant dense<0.000000e+00> : vector<1x32xf32>
    %37 = tpu.matmul %35, %36, %cst_10 {dimension_numbers = #tpu.dot_dimension_numbers<[1], [0], [0], [1], [0, 0, 1, 1], [], []>, precision = #tpu.contract_precision<fp32>} : vector<1x64xf32>, vector<64x32xf32>, vector<1x32xf32> -> vector<1x32xf32>
    %cst_11 = arith.constant 0.0169491526 : f32
    %38 = vector.broadcast %cst_11 : f32 to vector<1x32xf32>
    %39 = arith.mulf %37, %38 : vector<1x32xf32>
    %cst_12 = arith.constant 9.99999993E-9 : f32
    %40 = vector.broadcast %cst_12 : f32 to vector<1x32xf32>
    %41 = arith.addf %39, %40 : vector<1x32xf32>
    %42 = math.sqrt %41 : vector<1x32xf32>
    %c0_13 = arith.constant 0 : index
    %c0_14 = arith.constant 0 : index
    %43 = vector.load %arg2[%c0_13, %c0_14] : memref<1x32xf32, #tpu.memory_space<vmem>>, vector<1x32xf32>
    %44 = tpu.iota {dimensions = array<i32: 0>} : vector<32x32xi32>
    %45 = tpu.iota {dimensions = array<i32: 1>} : vector<32x32xi32>
    %46 = arith.cmpi eq, %44, %45 : vector<32x32xi32>
    %cst_15 = arith.constant 1.000000e+00 : f32
    %cst_16 = arith.constant 0.000000e+00 : f32
    %47 = vector.broadcast %cst_15 : f32 to vector<32x32xf32>
    %48 = vector.broadcast %cst_16 : f32 to vector<32x32xf32>
    %49 = arith.select %46, %47, %48 : vector<32x32xi1>, vector<32x32xf32>
    %cst_17 = arith.constant dense<0.000000e+00> : vector<32x1xf32>
    %50 = tpu.matmul %49, %43, %cst_17 {dimension_numbers = #tpu.dot_dimension_numbers<[1], [1], [0], [0], [0, 0, 1, 0], [], []>, precision = #tpu.contract_precision<fp32>} : vector<32x32xf32>, vector<1x32xf32>, vector<32x1xf32> -> vector<32x1xf32>
    %51 = vector.broadcast %43 : vector<1x32xf32> to vector<32x32xf32>
    %52 = vector.broadcast %50 : vector<32x1xf32> to vector<32x32xf32>
    %53 = arith.cmpf ole, %51, %52 : vector<32x32xf32>
    %54 = arith.extui %53 : vector<32x32xi1> to vector<32x32xi32>
    %55 = arith.sitofp %54 : vector<32x32xi32> to vector<32x32xf32>
    %cst_18 = arith.constant dense<0.000000e+00> : vector<32xf32>
    %56 = vector.multi_reduction <add>, %55, %cst_18 [1] : vector<32x32xf32> to vector<32xf32>
    %57 = vector.shape_cast %56 : vector<32xf32> to vector<32x1xf32>
    %cst_19 = arith.constant 2.000000e+00 : f32
    %58 = vector.broadcast %cst_19 : f32 to vector<32x1xf32>
    %59 = arith.cmpf oge, %57, %58 : vector<32x1xf32>
    %cst_20 = arith.constant 3.000000e+38 : f32
    %60 = vector.broadcast %cst_20 : f32 to vector<32x1xf32>
    %61 = arith.select %59, %50, %60 : vector<32x1xi1>, vector<32x1xf32>
    %62 = vector.shape_cast %61 : vector<32x1xf32> to vector<1x32x1xf32>
    %cst_21 = arith.constant dense<0x7F800000> : vector<1xf32>
    %63 = vector.multi_reduction <minimumf>, %62, %cst_21 [1, 2] : vector<1x32x1xf32> to vector<1xf32>
    %64 = vector.shape_cast %63 : vector<1xf32> to vector<1x1x1xf32>
    %65 = vector.extract %64[0, 0, 0] : f32 from vector<1x1x1xf32>
    %cst_22 = arith.constant 0.000000e+00 : f32
    %66 = arith.subf %cst_22, %65 : f32
    %cst_23 = arith.constant 2.000000e-02 : f32
    %67 = arith.subf %66, %cst_23 : f32
    %cst_24 = arith.constant 0.000000e+00 : f32
    %68 = arith.maximumf %67, %cst_24 : f32
    %cst_25 = arith.constant 1.000000e+01 : f32
    %69 = arith.mulf %68, %cst_25 : f32
    %70 = arith.mulf %0, %0 : vector<32x128xf32>
    %71 = vector.shape_cast %70 : vector<32x128xf32> to vector<1x32x128xf32>
    %cst_26 = arith.constant dense<0.000000e+00> : vector<1xf32>
    %72 = vector.multi_reduction <add>, %71, %cst_26 [1, 2] : vector<1x32x128xf32> to vector<1xf32>
    %73 = vector.shape_cast %72 : vector<1xf32> to vector<1x1x1xf32>
    %74 = vector.extract %73[0, 0, 0] : f32 from vector<1x1x1xf32>
    %cst_27 = arith.constant 3.125000e-02 : f32
    %75 = arith.mulf %74, %cst_27 : f32
    %cst_28 = arith.constant 0.00999999977 : f32
    %76 = arith.subf %75, %cst_28 : f32
    %cst_29 = arith.constant 0.000000e+00 : f32
    %77 = arith.maximumf %76, %cst_29 : f32
    %cst_30 = arith.constant 1.500000e+01 : f32
    %78 = arith.mulf %77, %cst_30 : f32
    %79 = math.sqrt %39 : vector<1x32xf32>
    %cst_31 = arith.constant 0.00944911223 : f32
    %80 = vector.broadcast %cst_31 : f32 to vector<1x32xf32>
    %81 = arith.subf %79, %80 : vector<1x32xf32>
    %cst_32 = arith.constant 0.000000e+00 : f32
    %82 = vector.broadcast %cst_32 : f32 to vector<1x32xf32>
    %83 = arith.maximumf %81, %82 : vector<1x32xf32>
    %84 = vector.shape_cast %83 : vector<1x32xf32> to vector<1x1x32xf32>
    %cst_33 = arith.constant dense<0.000000e+00> : vector<1xf32>
    %85 = vector.multi_reduction <add>, %84, %cst_33 [1, 2] : vector<1x1x32xf32> to vector<1xf32>
    %86 = vector.shape_cast %85 : vector<1xf32> to vector<1x1x1xf32>
    %87 = vector.extract %86[0, 0, 0] : f32 from vector<1x1x1xf32>
    %cst_34 = arith.constant 1.562500e-01 : f32
    %88 = arith.mulf %87, %cst_34 : f32
    %89 = arith.addf %69, %78 : f32
    %90 = arith.addf %89, %88 : f32
    %91 = vector.extract_strided_slice %22 {offsets = [0, 0], sizes = [1, 128], strides = [1, 1]} : vector<8x128xf32> to vector<1x128xf32>
    %92 = vector.shape_cast %91 : vector<1x128xf32> to vector<1x1x128xf32>
    %cst_35 = arith.constant dense<0.000000e+00> : vector<1xf32>
    %93 = vector.multi_reduction <add>, %92, %cst_35 [1, 2] : vector<1x1x128xf32> to vector<1xf32>
    %94 = vector.shape_cast %93 : vector<1xf32> to vector<1x1x1xf32>
    %95 = vector.extract %94[0, 0, 0] : f32 from vector<1x1x1xf32>
    %96 = vector.extract_strided_slice %22 {offsets = [1, 0], sizes = [1, 128], strides = [1, 1]} : vector<8x128xf32> to vector<1x128xf32>
    %97 = vector.shape_cast %96 : vector<1x128xf32> to vector<1x1x128xf32>
    %cst_36 = arith.constant dense<0.000000e+00> : vector<1xf32>
    %98 = vector.multi_reduction <add>, %97, %cst_36 [1, 2] : vector<1x1x128xf32> to vector<1xf32>
    %99 = vector.shape_cast %98 : vector<1xf32> to vector<1x1x1xf32>
    %100 = vector.extract %99[0, 0, 0] : f32 from vector<1x1x1xf32>
    %101 = vector.extract_strided_slice %23 {offsets = [0, 0], sizes = [1, 128], strides = [1, 1]} : vector<8x128xf32> to vector<1x128xf32>
    %102 = vector.shape_cast %101 : vector<1x128xf32> to vector<1x1x128xf32>
    %cst_37 = arith.constant dense<0.000000e+00> : vector<1xf32>
    %103 = vector.multi_reduction <add>, %102, %cst_37 [1, 2] : vector<1x1x128xf32> to vector<1xf32>
    %104 = vector.shape_cast %103 : vector<1xf32> to vector<1x1x1xf32>
    %105 = vector.extract %104[0, 0, 0] : f32 from vector<1x1x1xf32>
    %106 = vector.extract_strided_slice %23 {offsets = [1, 0], sizes = [1, 128], strides = [1, 1]} : vector<8x128xf32> to vector<1x128xf32>
    %107 = vector.shape_cast %106 : vector<1x128xf32> to vector<1x1x128xf32>
    %cst_38 = arith.constant dense<0.000000e+00> : vector<1xf32>
    %108 = vector.multi_reduction <add>, %107, %cst_38 [1, 2] : vector<1x1x128xf32> to vector<1xf32>
    %109 = vector.shape_cast %108 : vector<1xf32> to vector<1x1x1xf32>
    %110 = vector.extract %109[0, 0, 0] : f32 from vector<1x1x1xf32>
    %cst_39 = arith.constant 2.6041668E-4 : f32
    %111 = arith.mulf %100, %cst_39 : f32
    %cst_40 = arith.constant 3.840000e+03 : f32
    %112 = arith.mulf %cst_40, %111 : f32
    %113 = arith.mulf %112, %111 : f32
    %114 = arith.subf %110, %113 : f32
    %cst_41 = arith.constant 0.000000e+00 : f32
    %115 = arith.maximumf %114, %cst_41 : f32
    %cst_42 = arith.constant 2.60484492E-4 : f32
    %116 = arith.mulf %115, %cst_42 : f32
    %117 = arith.subf %95, %100 : f32
    %cst_43 = arith.constant 2.29779413E-4 : f32
    %118 = arith.mulf %117, %cst_43 : f32
    %119 = arith.subf %105, %110 : f32
    %cst_44 = arith.constant 4.352000e+03 : f32
    %120 = arith.mulf %cst_44, %118 : f32
    %121 = arith.mulf %120, %118 : f32
    %122 = arith.subf %119, %121 : f32
    %cst_45 = arith.constant 0.000000e+00 : f32
    %123 = arith.maximumf %122, %cst_45 : f32
    %cst_46 = arith.constant 2.29832222E-4 : f32
    %124 = arith.mulf %123, %cst_46 : f32
    %125 = math.sqrt %116 : f32
    %126 = math.sqrt %124 : f32
    %127 = arith.subf %125, %126 : f32
    %128 = math.absf %127 : f32
    %cst_47 = arith.constant 9.99999993E-9 : f32
    %129 = arith.addf %126, %cst_47 : f32
    %130 = arith.divf %128, %129 : f32
    %cst_48 = arith.constant 1.000000e-01 : f32
    %131 = arith.mulf %130, %cst_48 : f32
    %132 = arith.addf %90, %131 : f32
    %133 = tpu.iota {dimensions = array<i32: 1>} : vector<1x32xi32>
    %c0_i32_49 = arith.constant 0 : i32
    %134 = vector.broadcast %c0_i32_49 : i32 to vector<1x32xi32>
    %135 = arith.cmpi eq, %133, %134 : vector<1x32xi32>
    %cst_50 = arith.constant 0.000000e+00 : f32
    %136 = vector.broadcast %69 : f32 to vector<1x32xf32>
    %137 = vector.broadcast %cst_50 : f32 to vector<1x32xf32>
    %138 = arith.select %135, %136, %137 : vector<1x32xi1>, vector<1x32xf32>
    %c1_i32_51 = arith.constant 1 : i32
    %139 = vector.broadcast %c1_i32_51 : i32 to vector<1x32xi32>
    %140 = arith.cmpi eq, %133, %139 : vector<1x32xi32>
    %cst_52 = arith.constant 0.000000e+00 : f32
    %141 = vector.broadcast %78 : f32 to vector<1x32xf32>
    %142 = vector.broadcast %cst_52 : f32 to vector<1x32xf32>
    %143 = arith.select %140, %141, %142 : vector<1x32xi1>, vector<1x32xf32>
    %144 = arith.addf %138, %143 : vector<1x32xf32>
    %c2_i32_53 = arith.constant 2 : i32
    %145 = vector.broadcast %c2_i32_53 : i32 to vector<1x32xi32>
    %146 = arith.cmpi eq, %133, %145 : vector<1x32xi32>
    %cst_54 = arith.constant 0.000000e+00 : f32
    %147 = vector.broadcast %88 : f32 to vector<1x32xf32>
    %148 = vector.broadcast %cst_54 : f32 to vector<1x32xf32>
    %149 = arith.select %146, %147, %148 : vector<1x32xi1>, vector<1x32xf32>
    %c3_i32 = arith.constant 3 : i32
    %150 = vector.broadcast %c3_i32 : i32 to vector<1x32xi32>
    %151 = arith.cmpi eq, %133, %150 : vector<1x32xi32>
    %cst_55 = arith.constant 0.000000e+00 : f32
    %152 = vector.broadcast %90 : f32 to vector<1x32xf32>
    %153 = vector.broadcast %cst_55 : f32 to vector<1x32xf32>
    %154 = arith.select %151, %152, %153 : vector<1x32xi1>, vector<1x32xf32>
    %155 = arith.addf %149, %154 : vector<1x32xf32>
    %c4_i32_56 = arith.constant 4 : i32
    %156 = vector.broadcast %c4_i32_56 : i32 to vector<1x32xi32>
    %157 = arith.cmpi eq, %133, %156 : vector<1x32xi32>
    %cst_57 = arith.constant 0.000000e+00 : f32
    %158 = vector.broadcast %131 : f32 to vector<1x32xf32>
    %159 = vector.broadcast %cst_57 : f32 to vector<1x32xf32>
    %160 = arith.select %157, %158, %159 : vector<1x32xi1>, vector<1x32xf32>
    %c5_i32 = arith.constant 5 : i32
    %161 = vector.broadcast %c5_i32 : i32 to vector<1x32xi32>
    %162 = arith.cmpi eq, %133, %161 : vector<1x32xi32>
    %cst_58 = arith.constant 0.000000e+00 : f32
    %163 = vector.broadcast %130 : f32 to vector<1x32xf32>
    %164 = vector.broadcast %cst_58 : f32 to vector<1x32xf32>
    %165 = arith.select %162, %163, %164 : vector<1x32xi1>, vector<1x32xf32>
    %166 = arith.addf %160, %165 : vector<1x32xf32>
    %c6_i32 = arith.constant 6 : i32
    %167 = vector.broadcast %c6_i32 : i32 to vector<1x32xi32>
    %168 = arith.cmpi eq, %133, %167 : vector<1x32xi32>
    %cst_59 = arith.constant 0.000000e+00 : f32
    %169 = vector.broadcast %131 : f32 to vector<1x32xf32>
    %170 = vector.broadcast %cst_59 : f32 to vector<1x32xf32>
    %171 = arith.select %168, %169, %170 : vector<1x32xi1>, vector<1x32xf32>
    %c7_i32 = arith.constant 7 : i32
    %172 = vector.broadcast %c7_i32 : i32 to vector<1x32xi32>
    %173 = arith.cmpi eq, %133, %172 : vector<1x32xi32>
    %cst_60 = arith.constant 0.000000e+00 : f32
    %174 = vector.broadcast %132 : f32 to vector<1x32xf32>
    %175 = vector.broadcast %cst_60 : f32 to vector<1x32xf32>
    %176 = arith.select %173, %174, %175 : vector<1x32xi1>, vector<1x32xf32>
    %177 = arith.addf %171, %176 : vector<1x32xf32>
    %178 = arith.addf %144, %155 : vector<1x32xf32>
    %179 = arith.addf %166, %177 : vector<1x32xf32>
    %180 = arith.addf %178, %179 : vector<1x32xf32>
    %181 = tpu.iota {dimensions = array<i32: 0>} : vector<3x32xi32>
    %c0_i32_61 = arith.constant 0 : i32
    %182 = vector.broadcast %c0_i32_61 : i32 to vector<3x32xi32>
    %183 = arith.cmpi eq, %181, %182 : vector<3x32xi32>
    %c1_i32_62 = arith.constant 1 : i32
    %184 = vector.broadcast %c1_i32_62 : i32 to vector<3x32xi32>
    %185 = arith.cmpi eq, %181, %184 : vector<3x32xi32>
    %186 = vector.shape_cast %42 : vector<1x32xf32> to vector<1x32xf32>
    %187 = vector.broadcast %186 : vector<1x32xf32> to vector<3x32xf32>
    %188 = vector.shape_cast %180 : vector<1x32xf32> to vector<1x32xf32>
    %189 = vector.broadcast %188 : vector<1x32xf32> to vector<3x32xf32>
    %190 = arith.select %185, %187, %189 : vector<3x32xi1>, vector<3x32xf32>
    %191 = vector.shape_cast %39 : vector<1x32xf32> to vector<1x32xf32>
    %192 = vector.broadcast %191 : vector<1x32xf32> to vector<3x32xf32>
    %193 = arith.select %183, %192, %190 : vector<3x32xi1>, vector<3x32xf32>
    %c0_63 = arith.constant 0 : index
    %c0_64 = arith.constant 0 : index
    %194 = vector.load %arg3[%c0_63, %c0_64] : memref<3x32xf32, #tpu.memory_space<vmem>>, vector<3x32xf32>
    tpu.vector_store %arg3[%c0_63, %c0_64], %193 {strides = array<i32>} : memref<3x32xf32, #tpu.memory_space<vmem>>, vector<3x32xf32>,
    return
  }
}

</mosaic_0001>

<bundles_post_ra>
// kernel: tpu_custom_call.1
= control target key start
LH: loop header
LB: loop body
LE: loop exit
PB: predicated region body
PF: predicated region fallthrough
CT: control target
= control target key end

     0   :  { %8 = vsyncpa [#allocation3], 0  ;;  %s2286_s0 = inlined_call_operand.hbm [shape: f32[32,128], index: 0, kind: input, shape index: {}]   ;;  %s2287_s1 = inlined_call_operand.hbm [shape: f32[64,128], index: 1, kind: input, shape index: {}]   ;;  %s2288_s2 = inlined_call_operand.vmem [shape: f32[1,32], index: 2, kind: input, shape index: {}]   ;;  %s2289_s3 = inlined_call_operand.hbm [shape: f32[3,32], index: 3, kind: output, shape index: {}]  }
   0x1   :  { %9 = vsyncpa [#allocation6], 0 }
   0x2   :  { %10 = vsyncpa [#allocation4], 0  ;;  %s15_s14 = sshll.u32 %s2286_s0, 4  ;;  %s1674_s15 = smov [#allocation2]   ;;  %s16_s14 = int_to_ptr.hbm [resolvable:$true] %s15_s14 }
   0x3   :  { %s17_s16 = sshll.u32 %s1674_s15, 4  ;;  %s28_s19 = sshll.u32 %s2287_s1, 4  ;;  %s18_s16 = int_to_ptr.vmem [resolvable:$true] %s17_s16  ;;  %s29_s19 = int_to_ptr.hbm [resolvable:$true] %s28_s19 }
   0x4   :  { %s1675_s20 = smov 128   ;;  %s1676_s21 = smov 8  }
   0x5   :  { %23 = dma.hbm_to_vmem [thread:$0]  %s16_s14, 512, %s18_s16, [#allocation3], %s1675_s20, %s1675_s20, %s1676_s21  }
   0x6   :  { %s1677_s22 = smov [#allocation5]  }
   0x7   :  { %s30_s23 = sshll.u32 %s1677_s22, 4  ;;  %s31_s23 = int_to_ptr.vmem [resolvable:$true] %s30_s23 }
   0x8   :  { %36 = dma.hbm_to_vmem [thread:$0]  %s29_s19, 1024, %s31_s23, [#allocation6], %s1675_s20, %s1675_s20, %s1676_s21  }
   0x9   :  { %1668 = dma.done.wait [#allocation3], 512  }
   0xa   :  { %1669 = vsyncadd [#allocation3], 4294966784 }
   0xb   :  { %1670 = dma.done.wait [#allocation6], 1024  }
   0xc   :  { %1671 = vsyncadd [#allocation6], 4294966272  ;;  %v59_v0 = vlaneseq  ;;  %v1724_v4 = vld [vmem:[#allocation5 + $0x38] sm:$0xff]  ;;  %v1726_v5 = vld [vmem:[#allocation5 + $0x30] sm:$0xff]  ;;  %vm81_vm9 = vcmask 523264   ;;  %v1678_v32 = vmov 0.0  }
   0xd   :  { %v1728_v6 = vld [vmem:[#allocation5 + $0x28] sm:$0xff]  ;;  %v1731_v7 = vand.u32 4294901760, %v1724_v4  ;;  %v1734_v8 = vand.u32 4294901760, %v1726_v5  ;;  %v1739_v10 = vld [vmem:[#allocation5 + $0x20] sm:$0xff]  ;;  %v1741_v11 = vld [vmem:[#allocation5 + $0x18] sm:$0xff]  ;;  %vm1269_vm12 = vcmask 261120  }
   0xe   :  { %v1707_v1 = vshrl.u32 %v59_v0, 7  ;;  %v1709_v2 = vand.u32 127, %v59_v0  ;;  %v1737_v9 = vand.u32 4294901760, %v1728_v6  ;;  %v1743_v12 = vld [vmem:[#allocation5 + $0x10] sm:$0xff]  ;;  %v1746_v13 = vand.u32 4294901760, %v1739_v10  ;;  %v1754_v16 = vld [vmem:[#allocation5 + $0x8] sm:$0xff] }
   0xf   :  { %v1749_v14 = vand.u32 4294901760, %v1741_v11  ;;  %v1752_v15 = vand.u32 4294901760, %v1743_v12  ;;  %94 = vmatpush.msra.mxu2 %v1731_v7  ;;  %v1765_v18 = vsub.f32 %v1724_v4, %v1731_v7  ;;  %v1769_v19 = vsub.f32 %v1726_v5, %v1734_v8  ;;  %v1778_v22 = vld [vmem:[#allocation5] sm:$0xff]  ;;  %302 = vmatpush.msra.mxu1 %v1731_v7  ;;  %s1679_s4 = smov 0.0  }
  0x10   :  { %vm63_vm0 = vcmp.eq.s32.totalorder %v1707_v1, 0  ;;  %vm64_vm1 = vcmp.eq.s32.totalorder %v1707_v1, 1  ;;  %vm65_vm2 = vcmp.ge.s32.totalorder %v1709_v2, 34  ;;  %vm68_vm5 = vcmp.eq.s32.totalorder %v1707_v1, 2  ;;  %v1838_v49 = vld [vmem:[%s2288_s2] ss:$0 sm:$0xff] }
  0x11   :  { %vm66_vm3 = vmand %vm64_vm1, %vm65_vm2  ;;  %vm69_vm6 = vcmp.ge.s32.totalorder %v1709_v2, 4  ;;  %v1772_v20 = vand.u32 4294901760, %v1754_v16  ;;  %v1776_v21 = vsub.f32 %v1728_v6, %v1737_v9  ;;  %v1787_v23 = vsub.f32 %v1739_v10, %v1746_v13  ;;  %96 = vmatpush.msra.mxu2 %v1734_v8  ;;  %304 = vmatpush.msra.mxu1 %v1734_v8 }
  0x12   :  { %vm1718_vm4 = vmor %vm63_vm0, %vm66_vm3  ;;  %v1791_v24 = vsub.f32 %v1741_v11, %v1749_v14  ;;  %v1795_v25 = vsub.f32 %v1743_v12, %v1752_v15  ;;  %v128_v26 = vand.u32 4294901760, %v1765_v18  ;;  %v134_v27 = vand.u32 4294901760, %v1769_v19 }
  0x13   :  { %vm1758_vm7 = vmand %vm68_vm5, %vm69_vm6  ;;  %v140_v28 = vand.u32 4294901760, %v1776_v21  ;;  %v1803_v29 = vand.u32 4294901760, %v1778_v22  ;;  %v146_v30 = vand.u32 4294901760, %v1787_v23  ;;  %v1808_v31 = vsub.f32 %v1754_v16, %v1772_v20  ;;  %98 = vmatpush.msra.mxu2 %v1737_v9  ;;  %306 = vmatpush.msra.mxu1 %v1737_v9 }
  0x14   :  { %vm71_vm8 = vmor %vm1718_vm4, %vm1758_vm7  ;;  %v129_v34 = vsub.f32 %v1765_v18, %v128_v26  ;;  %v135_v35 = vsub.f32 %v1769_v19, %v134_v27  ;;  %v152_v37 = vand.u32 4294901760, %v1791_v24  ;;  %259 = vmatpush.msra.mxu0 %v128_v26  ;;  %v158_v38 = vand.u32 4294901760, %v1795_v25 }
  0x15   :  { %v1811_v33 = vsel %vm71_vm8, 1.0, %v1678_v32  ;;  %v141_v36 = vsub.f32 %v1776_v21, %v140_v28  ;;  %100 = vmatpush.msra.mxu2 %v1746_v13  ;;  %v147_v42 = vsub.f32 %v1787_v23, %v146_v30  ;;  %v164_v43 = vand.u32 4294901760, %v1808_v31  ;;  %308 = vmatpush.msra.mxu1 %v1746_v13 }
  0x16   :  { %v83_v39 = vsel %vm81_vm9, %v1811_v33, 0  ;;  %v130_v40 = vand.u32 4294901760, %v129_v34  ;;  %v136_v41 = vand.u32 4294901760, %v135_v35  ;;  %263 = vmatpush.msra.mxu0 %v134_v27  ;;  %v153_v46 = vsub.f32 %v1791_v24, %v152_v37 }
  0x17   :  { %v1825_v44 = vsub.f32 %v83_v39, %v83_v39  ;;  %102 = vmatpush.msra.mxu2 %v1749_v14  ;;  %v142_v45 = vand.u32 4294901760, %v141_v36  ;;  %v1832_v47 = vsub.f32 %v1778_v22, %v1803_v29  ;;  %v561_v48 = vadd.s32 16, %v1707_v1  ;;  %310 = vmatpush.msra.mxu1 %v1749_v14 }
  0x18   :  { %131 = vmatpush.msra.mxu3 %v130_v40  ;;  %v159_v50 = vsub.f32 %v1795_v25, %v158_v38  ;;  %267 = vmatpush.msra.mxu0 %v140_v28  ;;  %vm1254_vm10 = vcmp.eq.s32.totalorder %v1707_v1, %v1709_v2  ;;  %v562_v52 = vadd.s32 24, %v1707_v1  ;;  %v148_v53 = vand.u32 4294901760, %v147_v42 }
  0x19   :  { %v1842_v51 = vand.u32 4294901760, %v1825_v44  ;;  %104 = vmatpush.msra.mxu2 %v1752_v15  ;;  %v170_v54 = vand.u32 4294901760, %v1832_v47  ;;  %vm1256_vm11 = vcmp.eq.s32.totalorder %v561_v48, %v1709_v2  ;;  %v1258_v55 = vsel %vm1254_vm10, 1.0, %v1678_v32  ;;  %312 = vmatpush.msra.mxu1 %v1752_v15 }
  0x1a   :  { %137 = vmatpush.msra.mxu3 %v136_v41  ;;  %271 = vmatpush.msra.mxu0 %v146_v30  ;;  %v1260_v57 = vsel %vm1256_vm11, 1.0, %v1678_v32  ;;  %v560_v58 = vadd.s32 8, %v1707_v1  ;;  %v154_v59 = vand.u32 4294901760, %v153_v46  ;;  %v165_v60 = vsub.f32 %v1808_v31, %v164_v43 }
  0x1b   :  { %v112_v56 = vsub.f32 %v1825_v44, %v1842_v51  ;;  %106 = vmatpush.msra.mxu2 %v1772_v20  ;;  %v1267_v61 = vmul.f32 %v1838_v49, %v1260_v57  ;;  %v1265_v62 = vmul.f32 %v1838_v49, %v1258_v55  ;;  %314 = vmatpush.msra.mxu1 %v1772_v20  ;;  %v160_v0 = vand.u32 4294901760, %v159_v50 }
  0x1c   :  { %143 = vmatpush.msra.mxu3 %v142_v45  ;;  %275 = vmatpush.msra.mxu0 %v152_v37  ;;  %vm1257_vm13 = vcmp.eq.s32.totalorder %v562_v52, %v1709_v2  ;;  %v171_v3 = vsub.f32 %v1832_v47, %v170_v54  ;;  %vm1255_vm14 = vcmp.eq.s32.totalorder %v560_v58, %v1709_v2  ;;  %v166_v27 = vand.u32 4294901760, %v165_v60 }
  0x1d   :  { %v1861_v63 = vand.u32 4294901760, %v112_v56  ;;  %108 = vmatpush.msra.mxu2 %v1803_v29  ;;  %v1276_v17 = vsel %vm1269_vm12, %v1267_v61, 0.0  ;;  %v80_v26 = vmul.f32 %v1724_v4, %v1724_v4  ;;  %v1270_v28 = vsel %vm1269_vm12, %v1265_v62, 0.0  ;;  %316 = vmatpush.msra.mxu1 %v1803_v29  ;;  %v1983_v62 = vld [vmem:[#allocation2] sm:$0xff] }
  0x1e   :  { %149 = vmatpush.msra.mxu3 %v148_v53  ;;  %279 = vmatpush.msra.mxu0 %v158_v38  ;;  %v1261_v30 = vsel %vm1257_vm13, 1.0, %v1678_v32  ;;  %v172_v34 = vand.u32 4294901760, %v171_v3  ;;  %v1259_v35 = vsel %vm1255_vm14, 1.0, %v1678_v32  ;;  %v78_v38 = vmul.f32 %v1728_v6, %v1728_v6 }
  0x1f   :  { %189 = vmatpush.msrb.mxu2 %v1765_v18  ;;  %1277 = vadd.xlane.f32.xlu1 %v1276_v17  ;;  %v79_v18 = vmul.f32 %v1726_v5, %v1726_v5  ;;  %v1268_v36 = vmul.f32 %v1838_v49, %v1261_v30  ;;  %v1881_v37 = vand.u32 4294901760, %v80_v26  ;;  %v76_v42 = vmul.f32 %v1741_v11, %v1741_v11  ;;  %v49_v17 = vld [vmem:[#allocation2 + $0x10] sm:$0xff] }
  0x20   :  { %155 = vmatpush.msra.mxu3 %v154_v59  ;;  %114 = vmatmul.f32.vlgmr.msra.gmra.mxu2 %v1861_v63  ;;  %v1900_v41 = vand.u32 4294901760, %v78_v38  ;;  %v74_v59 = vmul.f32 %v1754_v16, %v1754_v16  ;;  %v73_v3 = vmul.f32 %v1778_v22, %v1778_v22  ;;  %vm1376_vm4 = vcmask 1040384  }
  0x21   :  { %192 = vmatpush.msrb.mxu2 %v1769_v19  ;;  %283 = vmatpush.msra.mxu0 %v164_v43  ;;  %v1266_v19 = vmul.f32 %v1838_v49, %v1259_v35  ;;  %v1889_v39 = vand.u32 4294901760, %v79_v18  ;;  %v1279_v40 = vsel %vm1269_vm12, %v1268_v36, 0.0  ;;  %vm567_vm5 = vcmp.ge.s32.totalorder %v1707_v1, 4 }
  0x22   :  { %161 = vmatpush.msra.mxu3 %v160_v0  ;;  %1271 = vadd.xlane.f32.xlu0 %v1270_v28  ;;  %v1980_v60 = vand.u32 4294901760, %v74_v59  ;;  %v1985_v0 = vld [vmem:[#allocation2 + $0x8] sm:$0xff]  ;;  %v1995_v36 = vand.u32 4294901760, %v73_v3  ;;  %vm1362_vm13 = vcmask 253952   ;;  %vm1487_vm14 = vcmp.eq.s32.totalorder %v1709_v2, 0 }
  0x23   :  { %195 = vmatpush.msrb.mxu2 %v1776_v21  ;;  %287 = vmatpush.msra.mxu0 %v170_v54  ;;  %v77_v21 = vmul.f32 %v1739_v10, %v1739_v10  ;;  %v1329_v28 = vmul.f32 %v1985_v0, %v1985_v0 }
  0x24   :  { %167 = vmatpush.msra.mxu3 %v166_v27  ;;  %1542 = vmatmul.msk.f32.vlgmr.msra.gmra.mxu0 %vm81_vm9, %v1811_v33  ;;  %v1328_v27 = vmul.f32 %v1983_v62, %v1983_v62 }
  0x25   :  { %198 = vmatpush.msrb.mxu2 %v1787_v23  ;;  %v1898_v23 = vsub.f32 %v80_v26, %v1881_v37  ;;  %1543 = vmatmul.msk.f32.vlgmr.msra.gmra.mxu1 %vm81_vm9, %v1811_v33  ;;  %v1914_v43 = vand.u32 4294901760, %v77_v21  ;;  %v50_v26 = vld [vmem:[#allocation2 + $0x18] sm:$0xff] }
  0x26   :  { %173 = vmatpush.msra.mxu3 %v172_v34  ;;  %463 = vmatpush.msrb.mxu1 %v1881_v37  ;;  %v1331_v34 = vmul.f32 %v50_v26, %v50_v26  ;;  %v1332_v35 = vadd.f32 %v1329_v28, %v1328_v27 }
  0x27   :  { %201 = vmatpush.msrb.mxu2 %v1791_v24  ;;  %1541 = vmatmul.msk.f32.vlgmr.msra.gmra.mxu3 %vm81_vm9, %v1811_v33  ;;  %v1912_v24 = vsub.f32 %v79_v18, %v1889_v39  ;;  %v365_v45 = vand.u32 4294901760, %v1898_v23  ;;  %v1330_v18 = vmul.f32 %v49_v17, %v49_v17 }
  0x28   :  { %226 = vmatpush.msrb.mxu3 %v1731_v7  ;;  %v1273_v7 = vsel %vm1269_vm12, %v1266_v19, 0.0  ;;  %1280 = vadd.xlane.f32.xlu1 %v1279_v40 }
  0x29   :  { %204 = vmatpush.msrb.mxu2 %v1795_v25  ;;  %v1921_v25 = vsub.f32 %v78_v38, %v1900_v41  ;;  %465 = vmatpush.msrb.mxu1 %v1889_v39  ;;  %v371_v46 = vand.u32 4294901760, %v1912_v24  ;;  %v400_v38 = vsub.f32 %v74_v59, %v1980_v60 }
  0x2a   :  { %228 = vmatpush.msrb.mxu3 %v1734_v8  ;;  %v1923_v8 = vand.u32 4294901760, %v76_v42  ;;  %1274 = vadd.xlane.f32.xlu0 %v1273_v7 }
  0x2b   :  { %207 = vmatpush.msrb.mxu2 %v1808_v31  ;;  %v1930_v31 = vsub.f32 %v77_v21, %v1914_v43  ;;  %467 = vmatpush.msrb.mxu1 %v1900_v41  ;;  %v1333_v21 = vadd.f32 %v1332_v35, %v1330_v18  ;;  %v401_v40 = vand.u32 4294901760, %v400_v38 }
  0x2c   :  { %230 = vmatpush.msrb.mxu3 %v1737_v9  ;;  %v75_v9 = vmul.f32 %v1743_v12, %v1743_v12  ;;  %v1943_v48 = vsub.f32 %v76_v42, %v1923_v8  ;;  %426 = vmatpush.msrb.mxu0 %v1898_v23  ;;  %v406_v42 = vsub.f32 %v73_v3, %v1995_v36 }
  0x2d   :  { %210 = vmatpush.msrb.mxu2 %v1832_v47  ;;  %v377_v47 = vand.u32 4294901760, %v1921_v25  ;;  %469 = vmatpush.msrb.mxu1 %v1914_v43  ;;  %v383_v50 = vand.u32 4294901760, %v1930_v31 }
  0x2e   :  { %232 = vmatpush.msrb.mxu3 %v1746_v13  ;;  %213 = vmatmul.f32.vlgmr.msrb.gmra.mxu2 %v1825_v44  ;;  %v366_v13 = vsub.f32 %v1898_v23, %v365_v45  ;;  %v1953_v52 = vand.u32 4294901760, %v75_v9  ;;  %v389_v54 = vand.u32 4294901760, %v1943_v48 }
  0x2f   :  { %331 = vmatpush.msra.mxu2 %v1881_v37  ;;  %471 = vmatpush.msrb.mxu1 %v1923_v8 }
  0x30   :  { %234 = vmatpush.msrb.mxu3 %v1749_v14  ;;  %v372_v14 = vsub.f32 %v1912_v24, %v371_v46  ;;  %429 = vmatpush.msrb.mxu0 %v1912_v24  ;;  %v367_v53 = vand.u32 4294901760, %v366_v13  ;;  %v390_v57 = vsub.f32 %v1943_v48, %v389_v54  ;;  %v394_v61 = vsub.f32 %v75_v9, %v1953_v52 }
  0x31   :  { %333 = vmatpush.msra.mxu2 %v1889_v39  ;;  %473 = vmatpush.msrb.mxu1 %v1953_v52  ;;  %v1334_v9 = vadd.f32 %v1333_v21, %v1331_v34  ;;  %v402_v13 = vsub.f32 %v400_v38, %v401_v40 }
  0x32   :  { %236 = vmatpush.msrb.mxu3 %v1752_v15  ;;  %v378_v15 = vsub.f32 %v1921_v25, %v377_v47  ;;  %432 = vmatpush.msrb.mxu0 %v1921_v25  ;;  %v373_v55 = vand.u32 4294901760, %v372_v14  ;;  %v391_v58 = vand.u32 4294901760, %v390_v57  ;;  %v395_v30 = vand.u32 4294901760, %v394_v61 }
  0x33   :  { %335 = vmatpush.msra.mxu2 %v1900_v41  ;;  %475 = vmatpush.msrb.mxu1 %v1980_v60  ;;  %v407_v14 = vand.u32 4294901760, %v406_v42  ;;  %v2026_v25 = vand.u32 4294901760, %v1985_v0 }
  0x34   :  { %238 = vmatpush.msrb.mxu3 %v1772_v20  ;;  %v384_v20 = vsub.f32 %v1930_v31, %v383_v50  ;;  %435 = vmatpush.msrb.mxu0 %v1930_v31  ;;  %v379_v56 = vand.u32 4294901760, %v378_v15  ;;  %v396_v19 = vsub.f32 %v394_v61, %v395_v30  ;;  %v403_v15 = vand.u32 4294901760, %v402_v13 }
  0x35   :  { %337 = vmatpush.msra.mxu2 %v1914_v43  ;;  %477 = vmatpush.msrb.mxu1 %v1995_v36 }
  0x36   :  { %240 = vmatpush.msrb.mxu3 %v1803_v29  ;;  %438 = vmatpush.msrb.mxu0 %v1943_v48  ;;  %v385_v29 = vand.u32 4294901760, %v384_v20  ;;  %v397_v7 = vand.u32 4294901760, %v396_v19 }
  0x37   :  { %244 = vmatmul.f32.vlgmr.msrb.gmra.mxu3 %v1842_v51  ;;  %339 = vmatpush.msra.mxu2 %v1923_v8 }
  0x38   :  { %368 = vmatpush.msra.mxu3 %v367_v53  ;;  %441 = vmatpush.msrb.mxu0 %v394_v61  ;;  %v2005_v53 = vand.u32 4294901760, %v50_v26 }
  0x39   :  { %341 = vmatpush.msra.mxu2 %v1953_v52  ;;  %481 = vmatmul.f32.vlgmr.msrb.gmra.mxu1 %v1842_v51 }
  0x3a   :  { %374 = vmatpush.msra.mxu3 %v373_v55  ;;  %444 = vmatpush.msrb.mxu0 %v400_v38  ;;  %v408_v55 = vsub.f32 %v406_v42, %v407_v14  ;;  %v690_v24 = vsub.f32 %v50_v26, %v2005_v53 }
  0x3b   :  { %343 = vmatpush.msra.mxu2 %v1980_v60  ;;  %1335 = vadd.xlane.f32.xlu2 %v1334_v9 }
  0x3c   :  { %380 = vmatpush.msra.mxu3 %v379_v56  ;;  %447 = vmatpush.msrb.mxu0 %v406_v42  ;;  %v409_v23 = vand.u32 4294901760, %v408_v55  ;;  %v702_v56 = vsub.f32 %v1985_v0, %v2026_v25 }
  0x3d   :  { %345 = vmatpush.msra.mxu2 %v1995_v36  ;;  %450 = vmatmul.f32.vlgmr.msrb.gmra.mxu0 %v1825_v44 }
  0x3e   :  { %386 = vmatpush.msra.mxu3 %v385_v29  ;;  %351 = vmatmul.f32.vlgmr.msra.gmra.mxu2 %v1861_v63  ;;  %v703_v57 = vand.u32 4294901760, %v702_v56 }
  0x3f   :  { %496 = vmatpush.msrb.mxu2 %v365_v45  ;;  %605 = vmatpush.xpose.msra.mxu0 %v2005_v53  ;;  %v2015_v45 = vand.u32 4294901760, %v49_v17 }
  0x40   :  { %392 = vmatpush.msra.mxu3 %v391_v58  ;;  %v704_v58 = vsub.f32 %v702_v56, %v703_v57 }
  0x41   :  { %500 = vmatpush.msrb.mxu2 %v371_v46  ;;  %v696_v46 = vsub.f32 %v49_v17, %v2015_v45 }
  0x42   :  { %398 = vmatpush.msra.mxu3 %v397_v7  ;;  %v705_v0 = vand.u32 4294901760, %v704_v58 }
  0x43   :  { %504 = vmatpush.msrb.mxu2 %v377_v47  ;;  %607 = vmatpush.xpose.msra.mxu0 %v2015_v45 }
  0x44   :  { %404 = vmatpush.msra.mxu3 %v403_v15 }
  0x45   :  { %508 = vmatpush.msrb.mxu2 %v383_v50 }
  0x46   :  { %410 = vmatpush.msra.mxu3 %v409_v23 }
  0x47   :  { %512 = vmatpush.msrb.mxu2 %v389_v54  ;;  %1544 = vmatmul.msk.f32.vlgmr.msra.gmra.mxu3 %vm81_vm9, %v1811_v33  ;;  %v697_v54 = vand.u32 4294901760, %v696_v46 }
  0x48   :  { %539 = vmatpush.msrb.mxu3 %v1881_v37  ;;  %v691_v37 = vand.u32 4294901760, %v690_v24  ;;  %609 = vmatpush.xpose.msra.mxu0 %v2026_v25 }
  0x49   :  { %516 = vmatpush.msrb.mxu2 %v395_v30 }
  0x4a   :  { %541 = vmatpush.msrb.mxu3 %v1889_v39  ;;  %v692_v48 = vsub.f32 %v690_v24, %v691_v37  ;;  %v610_v39 = vand.u32 4294901760, %v1983_v62 }
  0x4b   :  { %520 = vmatpush.msrb.mxu2 %v401_v40 }
  0x4c   :  { %543 = vmatpush.msrb.mxu3 %v1900_v41  ;;  %v693_v41 = vand.u32 4294901760, %v692_v48  ;;  %611 = vmatpush.xpose.msra.mxu0 %v610_v39 }
  0x4d   :  { %524 = vmatpush.msrb.mxu2 %v407_v14 }
  0x4e   :  { %545 = vmatpush.msrb.mxu3 %v1914_v43  ;;  %1545 = vmatmul.msk.f32.vlgmr.msrb.gmra.mxu2 %vm81_vm9, %v1811_v33  ;;  %v698_v43 = vsub.f32 %v696_v46, %v697_v54 }
  0x4f   :  { %760 = vmatpush.xpose.msra.mxu2 %v690_v24  ;;  %694 = vmatpush.xpose.msra.mxu1 %v693_v41 }
  0x50   :  { %547 = vmatpush.msrb.mxu3 %v1923_v8  ;;  %v699_v8 = vand.u32 4294901760, %v698_v43  ;;  %895 = vmatpush.xpose.msrb.mxu0 %v691_v37 }
  0x52   :  { %549 = vmatpush.msrb.mxu3 %v1953_v52  ;;  %v708_v52 = vsub.f32 %v1983_v62, %v610_v39 }
  0x53   :  { %763 = vmatpush.xpose.msra.mxu2 %v696_v46  ;;  %700 = vmatpush.xpose.msra.mxu1 %v699_v8 }
  0x54   :  { %551 = vmatpush.msrb.mxu3 %v1980_v60  ;;  %v709_v3 = vand.u32 4294901760, %v708_v52  ;;  %899 = vmatpush.xpose.msrb.mxu0 %v697_v54 }
  0x56   :  { %553 = vmatpush.msrb.mxu3 %v1995_v36  ;;  %v710_v26 = vsub.f32 %v708_v52, %v709_v3 }
  0x57   :  { %1546 = vmatmul.msk.f32.vlgmr.msrb.gmra.mxu3 %vm81_vm9, %v1811_v33  ;;  %766 = vmatpush.xpose.msra.mxu2 %v702_v56 }
  0x58   :  { %824 = vmatpush.xpose.msra.mxu3 %v2005_v53  ;;  %706 = vmatpush.xpose.msra.mxu1 %v705_v0 }
  0x59   :  { %903 = vmatpush.xpose.msrb.mxu0 %v703_v57 }
  0x5b   :  { %769 = vmatpush.xpose.msra.mxu2 %v708_v52 }
  0x5c   :  { %826 = vmatpush.xpose.msra.mxu3 %v2015_v45 }
  0x5d   :  { %907 = vmatpush.xpose.msrb.mxu0 %v709_v3 }
  0x60   :  { %828 = vmatpush.xpose.msra.mxu3 %v2026_v25 }
  0x64   :  { %830 = vmatpush.xpose.msra.mxu3 %v610_v39 }
  0x92   :  { %v2029_v31 = vpop.xlane.xlu1 %1277 }
  0x95   :  { %v2033_v47 = vpop.xlane.xlu0 %1271 }
  0x96   :  { %vm1282_vm15 = vcmp.le.f32.partialorder %v1838_v49, %v2033_v47 }
  0x97   :  { %v1550_v50 = vsel %vm1282_vm15, 1.0, %v1678_v32  ;;  %vm1490_vm15 = vcmp.eq.s32.totalorder %v1709_v2, 1 }
  0x98   :  { %v1294_v20 = vsel %vm1269_vm12, %v1550_v50, 0.0 }
  0x99   :  { %1295 = vadd.xlane.f32.xlu2 %v1294_v20 }
  0x9b   :  { %v2048_v29 = vpop.xlane.xlu1 %1280 }
  0x9c   :  { %vm1285_vm2 = vcmp.le.f32.partialorder %v1838_v49, %v2048_v29 }
  0x9d   :  { %v2054_v59 = vpop.xlane.xlu0 %1274  ;;  %v1553_v61 = vsel %vm1285_vm2, 1.0, %v1678_v32  ;;  %vm1494_vm2 = vcmp.eq.s32.totalorder %v1709_v2, 2 }
  0x9e   :  { %vm1283_vm3 = vcmp.le.f32.partialorder %v1838_v49, %v2054_v59  ;;  %v1303_v60 = vsel %vm1269_vm12, %v1553_v61, 0.0  ;;  %v711_v49 = vand.u32 4294901760, %v710_v26 }
  0x9f   :  { %1304 = vadd.xlane.f32.xlu1 %v1303_v60  ;;  %v1551_v62 = vsel %vm1283_vm3, 1.0, %v1678_v32  ;;  %vm1497_vm3 = vcmp.eq.s32.totalorder %v1709_v2, 3 }
  0xa0   :  { %v1297_v17 = vsel %vm1269_vm12, %v1551_v62, 0.0  ;;  %712 = vmatpush.xpose.msra.mxu1 %v711_v49 }
  0xa1   :  { %1298 = vadd.xlane.f32.xlu2 %v1297_v17  ;;  %v290_v36 = vpop.f32.mrf.mxu0 }
  0xa2   :  { %v319_v19 = vpop.f32.mrf.mxu1 }
  0xa3   :  { %v115_v27 = vpop.f32.mrf.mxu2 }
  0xa4   :  { %954 = vmatpush.xpose.msrb.mxu1 %v2005_v53 }
  0xa8   :  { %956 = vmatpush.xpose.msrb.mxu1 %v2015_v45 }
  0xaa   :  { %v176_v28 = vpop.f32.mrf.mxu3 }
  0xab   :  { %v177_v30 = vadd.f32 %v176_v28, %v115_v27 }
  0xac   :  { %958 = vmatpush.xpose.msrb.mxu1 %v2026_v25 }
  0xb0   :  { %960 = vmatpush.xpose.msrb.mxu1 %v610_v39 }
  0xb1   :  { %v214_v18 = vpop.f32.mrf.mxu2 }
  0xb2   :  { %v215_v34 = vadd.f32 %v214_v18, %v177_v30 }
  0xba   :  { %v245_v35 = vpop.f32.mrf.mxu3 }
  0xbb   :  { %v246_v38 = vadd.f32 %v245_v35, %v215_v34 }
  0xbd   :  { %v291_v21 = vadd.f32 %v290_v36, %v246_v38 }
  0xbf   :  { %v320_v40 = vadd.f32 %v319_v19, %v291_v21 }
  0xc1   :  { %v559_v42 = vmul.f32 0.016666668, %v320_v40  ;;  %v1377_v7 = vsel %vm1376_vm4, %v320_v40, 0.0  ;;  %v1388_v9 = vrot.slane %v320_v40, 1 }
  0xc2   :  { %1378 = vadd.xlane.f32.xlu1 %v1377_v7 }
  0xc3   :  { %v2071_v13 = vperm.slane %v559_v42, 2  ;;  %v1390_v14 = vsel %vm1376_vm4, %v1388_v9, 0.0 }
  0xc4   :  { %1391 = vadd.xlane.f32.xlu2 %v1390_v14  ;;  %v451_v14 = vpop.f32.mrf.mxu0 }
  0xc5   :  { %v576_v53 = vsub.f32 %v1778_v22, %v2071_v13  ;;  %v577_v15 = vsub.f32 %v1754_v16, %v2071_v13  ;;  %v578_v37 = vsub.f32 %v1743_v12, %v2071_v13  ;;  %v579_v54 = vsub.f32 %v1741_v11, %v2071_v13 }
  0xc6   :  { %v580_v57 = vsub.f32 %v1739_v10, %v2071_v13  ;;  %v581_v0 = vsub.f32 %v1728_v6, %v2071_v13  ;;  %v582_v49 = vsub.f32 %v1726_v5, %v2071_v13  ;;  %v583_v34 = vsub.f32 %v1724_v4, %v2071_v13  ;;  %v352_v4 = vpop.f32.mrf.mxu2 }
  0xc7   :  { %v584_v55 = vsel %vm567_vm5, %v576_v53, 0.0  ;;  %v2081_v45 = vand.u32 4294901760, %v577_v15  ;;  %v2088_v39 = vand.u32 4294901760, %v578_v37  ;;  %v2094_v12 = vand.u32 4294901760, %v579_v54 }
  0xc8   :  { %v2079_v23 = vand.u32 4294901760, %v584_v55  ;;  %v2100_v61 = vand.u32 4294901760, %v580_v57  ;;  %v652_v17 = vand.u32 4294901760, %v581_v0  ;;  %v660_v30 = vand.u32 4294901760, %v582_v49 }
  0xc9   :  { %v621_v46 = vsub.f32 %v577_v15, %v2081_v45  ;;  %v629_v41 = vsub.f32 %v578_v37, %v2088_v39  ;;  %v637_v8 = vsub.f32 %v579_v54, %v2094_v12  ;;  %v668_v38 = vand.u32 4294901760, %v583_v34  ;;  %v482_v15 = vpop.f32.mrf.mxu1 }
  0xca   :  { %714 = vmatmul.f32.vlgmr.msra.gmra.mxu1 %v2079_v23  ;;  %v613_v24 = vsub.f32 %v584_v55, %v2079_v23  ;;  %v645_v60 = vsub.f32 %v580_v57, %v2100_v61  ;;  %v653_v26 = vsub.f32 %v581_v0, %v652_v17  ;;  %v661_v18 = vsub.f32 %v582_v49, %v660_v30  ;;  %v413_v9 = vpop.f32.mrf.mxu3 }
  0xcb   :  { %v622_v16 = vand.u32 4294901760, %v621_v46  ;;  %v630_v43 = vand.u32 4294901760, %v629_v41  ;;  %v638_v52 = vand.u32 4294901760, %v637_v8  ;;  %v669_v19 = vsub.f32 %v583_v34, %v668_v38 }
  0xcc   :  { %772 = vmatmul.f32.vlgmr.msra.gmra.mxu2 %v613_v24  ;;  %v614_v25 = vand.u32 4294901760, %v613_v24  ;;  %v646_v62 = vand.u32 4294901760, %v645_v60  ;;  %v654_v28 = vand.u32 4294901760, %v653_v26  ;;  %v662_v36 = vand.u32 4294901760, %v661_v18 }
  0xcd   :  { %v623_v50 = vsub.f32 %v621_v46, %v622_v16  ;;  %v631_v56 = vsub.f32 %v629_v41, %v630_v43  ;;  %v639_v11 = vsub.f32 %v637_v8, %v638_v52  ;;  %v670_v40 = vand.u32 4294901760, %v669_v19 }
  0xce   :  { %834 = vmatmul.f32.vlgmr.msra.gmra.mxu3 %v614_v25  ;;  %v615_v22 = vsub.f32 %v613_v24, %v614_v25  ;;  %v647_v10 = vsub.f32 %v645_v60, %v646_v62  ;;  %v655_v6 = vsub.f32 %v653_v26, %v654_v28  ;;  %v663_v5 = vsub.f32 %v661_v18, %v662_v36 }
  0xcf   :  { %v624_v20 = vand.u32 4294901760, %v623_v50  ;;  %v632_v58 = vand.u32 4294901760, %v631_v56  ;;  %v640_v3 = vand.u32 4294901760, %v639_v11  ;;  %v671_v42 = vsub.f32 %v669_v19, %v670_v40 }
  0xd0   :  { %v616_v48 = vand.u32 4294901760, %v615_v22  ;;  %v648_v27 = vand.u32 4294901760, %v647_v10  ;;  %v656_v35 = vand.u32 4294901760, %v655_v6  ;;  %v664_v21 = vand.u32 4294901760, %v663_v5 }
  0xd1   :  { %v672_v7 = vand.u32 4294901760, %v671_v42  ;;  %v414_v13 = vadd.f32 %v413_v9, %v352_v4  ;;  %v527_v24 = vpop.f32.mrf.mxu2 }
  0xd2   :  { %617 = vmatmul.f32.vlgmr.msra.gmra.mxu0 %v616_v48  ;;  %718 = vmatmul.f32.gmra.mxu1 %v2081_v45 }
  0xd3   :  { %v452_v53 = vadd.f32 %v451_v14, %v414_v13 }
  0xd4   :  { %777 = vmatmul.f32.gmra.mxu2 %v621_v46 }
  0xd5   :  { %v483_v55 = vadd.f32 %v482_v15, %v452_v53 }
  0xd6   :  { %840 = vmatmul.f32.gmra.mxu3 %v622_v16 }
  0xda   :  { %625 = vmatmul.f32.gmra.mxu0 %v624_v20  ;;  %722 = vmatmul.f32.gmra.mxu1 %v2088_v39  ;;  %v556_v25 = vpop.f32.mrf.mxu3 }
  0xdc   :  { %782 = vmatmul.f32.gmra.mxu2 %v629_v41 }
  0xde   :  { %846 = vmatmul.f32.gmra.mxu3 %v630_v43 }
  0xe2   :  { %633 = vmatmul.f32.gmra.mxu0 %v632_v58  ;;  %726 = vmatmul.f32.gmra.mxu1 %v2094_v12 }
  0xe4   :  { %787 = vmatmul.f32.gmra.mxu2 %v637_v8 }
  0xe6   :  { %852 = vmatmul.f32.gmra.mxu3 %v638_v52 }
  0xea   :  { %641 = vmatmul.f32.gmra.mxu0 %v640_v3  ;;  %730 = vmatmul.f32.gmra.mxu1 %v2100_v61 }
  0xec   :  { %792 = vmatmul.f32.gmra.mxu2 %v645_v60 }
  0xee   :  { %858 = vmatmul.f32.gmra.mxu3 %v646_v62 }
  0xf2   :  { %649 = vmatmul.f32.gmra.mxu0 %v648_v27  ;;  %734 = vmatmul.f32.gmra.mxu1 %v652_v17 }
  0xf4   :  { %797 = vmatmul.f32.gmra.mxu2 %v653_v26 }
  0xf6   :  { %864 = vmatmul.f32.gmra.mxu3 %v654_v28 }
  0xfa   :  { %657 = vmatmul.f32.gmra.mxu0 %v656_v35  ;;  %738 = vmatmul.f32.gmra.mxu1 %v660_v30 }
  0xfc   :  { %802 = vmatmul.f32.gmra.mxu2 %v661_v18 }
  0xfe   :  { %870 = vmatmul.f32.gmra.mxu3 %v662_v36 }
 0x102   :  { %665 = vmatmul.f32.gmra.mxu0 %v664_v21  ;;  %742 = vmatmul.f32.gmra.mxu1 %v668_v38 }
 0x104   :  { %807 = vmatmul.f32.gmra.mxu2 %v669_v19 }
 0x106   :  { %876 = vmatmul.f32.gmra.mxu3 %v670_v40 }
 0x10a   :  { %673 = vmatmul.f32.gmra.mxu0 %v672_v7  ;;  %962 = vmatmul.f32.vlgmr.msrb.gmra.mxu1 %v2079_v23 }
 0x112   :  { %909 = vmatmul.f32.vlgmr.msrb.gmra.mxu0 %v2079_v23  ;;  %966 = vmatmul.f32.gmra.mxu1 %v2081_v45  ;;  %v528_v23 = vadd.f32 %v527_v24, %v483_v55 }
 0x114   :  { %v2118_v46 = vadd.f32 %v556_v25, %v528_v23 }
 0x11a   :  { %913 = vmatmul.f32.gmra.mxu0 %v2081_v45  ;;  %970 = vmatmul.f32.gmra.mxu1 %v2088_v39  ;;  %v1411_v45 = vrot.slane %v2118_v46, 1 }
 0x11c   :  { %v1413_v37 = vsel %vm1376_vm4, %v1411_v45, 0.0 }
 0x11d   :  { %1414 = vadd.xlane.f32.xlu1 %v1413_v37 }
 0x122   :  { %917 = vmatmul.f32.gmra.mxu0 %v2088_v39  ;;  %974 = vmatmul.f32.gmra.mxu1 %v2094_v12 }
 0x12a   :  { %921 = vmatmul.f32.gmra.mxu0 %v2094_v12  ;;  %978 = vmatmul.f32.gmra.mxu1 %v2100_v61 }
 0x132   :  { %925 = vmatmul.f32.gmra.mxu0 %v2100_v61  ;;  %982 = vmatmul.f32.gmra.mxu1 %v652_v17 }
 0x13a   :  { %929 = vmatmul.f32.gmra.mxu0 %v652_v17  ;;  %986 = vmatmul.f32.gmra.mxu1 %v660_v30 }
 0x142   :  { %933 = vmatmul.f32.gmra.mxu0 %v660_v30  ;;  %990 = vmatmul.f32.gmra.mxu1 %v668_v38 }
 0x147   :  { %v715_v22 = vpop.f32.mrf.mxu1 }
 0x14a   :  { %937 = vmatmul.f32.gmra.mxu0 %v668_v38 }
 0x14f   :  { %v618_v48 = vpop.f32.mrf.mxu0  ;;  %v719_v16 = vpop.f32.mrf.mxu1 }
 0x150   :  { %v716_v39 = vadd.f32 %v715_v22, %v618_v48  ;;  %v773_v50 = vpop.f32.mrf.mxu2 }
 0x151   :  { %v835_v54 = vpop.f32.mrf.mxu3 }
 0x152   :  { %v774_v41 = vadd.f32 %v773_v50, %v716_v39 }
 0x154   :  { %v836_v20 = vadd.f32 %v835_v54, %v774_v41 }
 0x157   :  { %v626_v43 = vpop.f32.mrf.mxu0  ;;  %v723_v12 = vpop.f32.mrf.mxu1 }
 0x158   :  { %v720_v56 = vadd.f32 %v719_v16, %v626_v43  ;;  %v778_v28 = vpop.f32.mrf.mxu2 }
 0x159   :  { %v841_v18 = vpop.f32.mrf.mxu3 }
 0x15f   :  { %v634_v8 = vpop.f32.mrf.mxu0  ;;  %v727_v57 = vpop.f32.mrf.mxu1 }
 0x160   :  { %v724_v58 = vadd.f32 %v723_v12, %v634_v8  ;;  %v783_v34 = vpop.f32.mrf.mxu2 }
 0x161   :  { %v847_v19 = vpop.f32.mrf.mxu3 }
 0x162   :  { %v784_v54 = vadd.f32 %v783_v34, %v724_v58 }
 0x167   :  { %v642_v52 = vpop.f32.mrf.mxu0  ;;  %v731_v61 = vpop.f32.mrf.mxu1 }
 0x168   :  { %v728_v11 = vadd.f32 %v727_v57, %v642_v52  ;;  %v788_v42 = vpop.f32.mrf.mxu2 }
 0x169   :  { %v853_v7 = vpop.f32.mrf.mxu3 }
 0x16a   :  { %v789_v50 = vadd.f32 %v788_v42, %v728_v11 }
 0x16f   :  { %v650_v60 = vpop.f32.mrf.mxu0  ;;  %v735_v0 = vpop.f32.mrf.mxu1 }
 0x170   :  { %v732_v3 = vadd.f32 %v731_v61, %v650_v60  ;;  %v793_v13 = vpop.f32.mrf.mxu2  ;;  %v779_v61 = vadd.f32 %v778_v28, %v720_v56  ;;  %v854_v60 = vadd.f32 %v853_v7, %v789_v50 }
 0x171   :  { %v859_v14 = vpop.f32.mrf.mxu3 }
 0x172   :  { %v794_v48 = vadd.f32 %v793_v13, %v732_v3 }
 0x177   :  { %v658_v62 = vpop.f32.mrf.mxu0  ;;  %v739_v17 = vpop.f32.mrf.mxu1 }
 0x178   :  { %v736_v10 = vadd.f32 %v735_v0, %v658_v62  ;;  %v798_v55 = vpop.f32.mrf.mxu2 }
 0x179   :  { %v865_v25 = vpop.f32.mrf.mxu3 }
 0x17a   :  { %v799_v22 = vadd.f32 %v798_v55, %v736_v10 }
 0x17c   :  { %v866_v41 = vadd.f32 %v865_v25, %v799_v22 }
 0x17f   :  { %v666_v26 = vpop.f32.mrf.mxu0  ;;  %v743_v49 = vpop.f32.mrf.mxu1 }
 0x180   :  { %v740_v27 = vadd.f32 %v739_v17, %v666_v26  ;;  %v803_v45 = vpop.f32.mrf.mxu2  ;;  %v848_v17 = vadd.f32 %v847_v19, %v784_v54 }
 0x181   :  { %v871_v39 = vpop.f32.mrf.mxu3 }
 0x182   :  { %v804_v16 = vadd.f32 %v803_v45, %v740_v27 }
 0x184   :  { %v872_v43 = vadd.f32 %v871_v39, %v804_v16 }
 0x187   :  { %v674_v30 = vpop.f32.mrf.mxu0  ;;  %v963_v6 = vpop.f32.mrf.mxu1 }
 0x188   :  { %v744_v12 = vadd.f32 %v743_v49, %v674_v30  ;;  %v808_v26 = vpop.f32.mrf.mxu2 }
 0x189   :  { %v877_v34 = vpop.f32.mrf.mxu3 }
 0x18f   :  { %v910_v35 = vpop.f32.mrf.mxu0  ;;  %v967_v36 = vpop.f32.mrf.mxu1 }
 0x190   :  { %v911_v38 = vadd.f32 %v910_v35, %v836_v20  ;;  %v860_v20 = vadd.f32 %v859_v14, %v794_v48  ;;  %v842_v35 = vadd.f32 %v841_v18, %v779_v61 }
 0x192   :  { %v2125_v5 = vadd.f32 %v963_v6, %v911_v38  ;;  %v809_v6 = vadd.f32 %v808_v26, %v744_v12 }
 0x194   :  { %v878_v42 = vadd.f32 %v877_v34, %v809_v6 }
 0x197   :  { %v914_v21 = vpop.f32.mrf.mxu0  ;;  %v971_v40 = vpop.f32.mrf.mxu1 }
 0x198   :  { %v915_v49 = vadd.f32 %v914_v21, %v842_v35 }
 0x19f   :  { %v918_v4 = vpop.f32.mrf.mxu0  ;;  %v975_v9 = vpop.f32.mrf.mxu1 }
 0x1a0   :  { %v919_v11 = vadd.f32 %v918_v4, %v848_v17 }
 0x1a2   :  { %v972_v56 = vadd.f32 %v971_v40, %v919_v11 }
 0x1a4   :  { %v996_v4 = vmul.f32 %v972_v56, %v972_v56 }
 0x1a6   :  { %v2145_v22 = vand.u32 4294901760, %v996_v4 }
 0x1a7   :  { %v922_v53 = vpop.f32.mrf.mxu0  ;;  %v979_v15 = vpop.f32.mrf.mxu1 }
 0x1a8   :  { %v923_v10 = vadd.f32 %v922_v53, %v854_v60 }
 0x1aa   :  { %v976_v30 = vadd.f32 %v975_v9, %v923_v10 }
 0x1ac   :  { %v997_v53 = vmul.f32 %v976_v30, %v976_v30  ;;  %v1595_v30 = vld [vmem:[%s2288_s2] ss:$0 sm:$0xff] }
 0x1ad   :  { %vm1284_vm6 = vcmp.le.f32.partialorder %v1595_v30, %v2029_v31 }
 0x1ae   :  { %v2136_v45 = vand.u32 4294901760, %v997_v53  ;;  %v1552_v56 = vsel %vm1284_vm6, 1.0, %v1678_v32  ;;  %v1336_v32 = vpop.xlane.xlu2 %1335 }
 0x1af   :  { %v926_v24 = vpop.f32.mrf.mxu0  ;;  %v983_v23 = vpop.f32.mrf.mxu1 }
 0x1b0   :  { %v927_v0 = vadd.f32 %v926_v24, %v860_v20  ;;  %v968_v24 = vadd.f32 %v967_v36, %v915_v49  ;;  %v994_v36 = vmul.f32 %v2125_v5, %v2125_v5 }
 0x1b2   :  { %v980_v38 = vadd.f32 %v979_v15, %v927_v0  ;;  %v995_v9 = vmul.f32 %v968_v24, %v968_v24  ;;  %v2163_v20 = vand.u32 4294901760, %v994_v36 }
 0x1b4   :  { %v998_v28 = vmul.f32 %v980_v38, %v980_v38  ;;  %v2155_v50 = vand.u32 4294901760, %v995_v9 }
 0x1b6   :  { %v2131_v15 = vand.u32 4294901760, %v998_v28 }
 0x1b7   :  { %v930_v37 = vpop.f32.mrf.mxu0  ;;  %v987_v57 = vpop.f32.mrf.mxu1 }
 0x1b8   :  { %v931_v8 = vadd.f32 %v930_v37, %v866_v41  ;;  %v2148_v48 = vsub.f32 %v998_v28, %v2131_v15  ;;  %v2158_v41 = vsub.f32 %v997_v53, %v2136_v45  ;;  %v1305_v28 = vpop.xlane.xlu1 %1304  ;;  %v1337_v53 = vrot.slane %v1336_v32, 4 }
 0x1b9   :  { %vm1309_vm10 = vcmp.ge.f32.partialorder %v1305_v28, 2.0 }
 0x1ba   :  { %v984_v3 = vadd.f32 %v983_v23, %v931_v8  ;;  %v1069_v0 = vand.u32 4294901760, %v2158_v41 }
 0x1bc   :  { %v999_v13 = vmul.f32 %v984_v3, %v984_v3  ;;  %v1070_v3 = vsub.f32 %v2158_v41, %v1069_v0 }
 0x1be   :  { %v2129_v25 = vand.u32 4294901760, %v999_v13 }
 0x1bf   :  { %v934_v52 = vpop.f32.mrf.mxu0  ;;  %v991_v55 = vpop.f32.mrf.mxu1 }
 0x1c0   :  { %v935_v62 = vadd.f32 %v934_v52, %v872_v43  ;;  %v2139_v40 = vsub.f32 %v999_v13, %v2129_v25  ;;  %v2166_v43 = vsub.f32 %v996_v4, %v2145_v22  ;;  %v2175_v52 = vsub.f32 %v995_v9, %v2155_v50 }
 0x1c2   :  { %v988_v27 = vadd.f32 %v987_v57, %v935_v62  ;;  %v1057_v5 = vand.u32 4294901760, %v2139_v40  ;;  %v1063_v57 = vand.u32 4294901760, %v2148_v48  ;;  %v2183_v62 = vsub.f32 %v994_v36, %v2163_v20 }
 0x1c3   :  { %v1075_v6 = vand.u32 4294901760, %v2166_v43 }
 0x1c4   :  { %v1000_v58 = vmul.f32 %v988_v27, %v988_v27  ;;  %v1058_v60 = vsub.f32 %v2139_v40, %v1057_v5  ;;  %v1064_v26 = vsub.f32 %v2148_v48, %v1063_v57  ;;  %v1081_v27 = vand.u32 4294901760, %v2175_v52 }
 0x1c5   :  { %v1076_v11 = vsub.f32 %v2166_v43, %v1075_v6  ;;  %v1087_v38 = vand.u32 4294901760, %v2183_v62 }
 0x1c6   :  { %v2127_v7 = vand.u32 4294901760, %v1000_v58  ;;  %v1059_v10 = vand.u32 4294901760, %v1058_v60  ;;  %v1065_v35 = vand.u32 4294901760, %v1064_v26  ;;  %v1082_v34 = vsub.f32 %v2175_v52, %v1081_v27 }
 0x1c7   :  { %v938_v14 = vpop.f32.mrf.mxu0  ;;  %v1088_v49 = vsub.f32 %v2183_v62, %v1087_v38 }
 0x1c8   :  { %v939_v19 = vadd.f32 %v938_v14, %v878_v42  ;;  %v2134_v23 = vsub.f32 %v1000_v58, %v2127_v7  ;;  %v1071_v58 = vand.u32 4294901760, %v1070_v3  ;;  %v1077_v42 = vand.u32 4294901760, %v1076_v11  ;;  %v1379_v11 = vpop.xlane.xlu1 %1378 }
 0x1c9   :  { %v1083_v13 = vand.u32 4294901760, %v1082_v34  ;;  %v1089_v14 = vand.u32 4294901760, %v1088_v49 }
 0x1ca   :  { %v992_v18 = vadd.f32 %v991_v55, %v939_v19  ;;  %v1051_v39 = vand.u32 4294901760, %v2134_v23  ;;  %v1313_v55 = vsel %vm1309_vm10, %v2048_v29, 3e+38 }
 0x1cc   :  { %v1001_v21 = vmul.f32 %v992_v18, %v992_v18  ;;  %v1052_v8 = vsub.f32 %v2134_v23, %v1051_v39 }
 0x1ce   :  { %v2141_v37 = vand.u32 4294901760, %v1001_v21  ;;  %v1053_v17 = vand.u32 4294901760, %v1052_v8 }
 0x1d0   :  { %v2151_v16 = vsub.f32 %v1001_v21, %v2141_v37  ;;  %1011 = vmatpush.msrb.mxu2 %v2141_v37  ;;  %v1415_v30 = vpop.xlane.xlu1 %1414 }
 0x1d2   :  { %v1045_v54 = vand.u32 4294901760, %v2151_v16  ;;  %1013 = vmatpush.msrb.mxu2 %v2127_v7 }
 0x1d4   :  { %1015 = vmatpush.msrb.mxu2 %v2129_v25  ;;  %v1046_v12 = vsub.f32 %v2151_v16, %v1045_v54 }
 0x1d6   :  { %1017 = vmatpush.msrb.mxu2 %v2131_v15  ;;  %v1047_v61 = vand.u32 4294901760, %v1046_v12 }
 0x1d8   :  { %1019 = vmatpush.msrb.mxu2 %v2136_v45  ;;  %1048 = vmatpush.msrb.mxu3 %v1047_v61 }
 0x1da   :  { %1021 = vmatpush.msrb.mxu2 %v2145_v22  ;;  %1054 = vmatpush.msrb.mxu3 %v1053_v17 }
 0x1dc   :  { %1023 = vmatpush.msrb.mxu2 %v2155_v50  ;;  %1060 = vmatpush.msrb.mxu3 %v1059_v10 }
 0x1de   :  { %1025 = vmatpush.msrb.mxu2 %v2163_v20  ;;  %1066 = vmatpush.msrb.mxu3 %v1065_v35  ;;  %v1400_v35 = vsel %vm1376_vm4, %v2118_v46, 0.0 }
 0x1df   :  { %1031 = vmatmul.f32.vlgmr.msrb.gmra.mxu2 %v1861_v63  ;;  %v1300_v63 = vsel %vm1269_vm12, %v1552_v56, 0.0 }
 0x1e0   :  { %1106 = vmatpush.msra.mxu2 %v2151_v16  ;;  %1072 = vmatpush.msrb.mxu3 %v1071_v58  ;;  %v1380_v58 = vrot.slane %v1379_v11, 4 }
 0x1e1   :  { %1301 = vadd.xlane.f32.xlu0 %v1300_v63 }
 0x1e2   :  { %1109 = vmatpush.msra.mxu2 %v2134_v23  ;;  %1078 = vmatpush.msrb.mxu3 %v1077_v42  ;;  %v1381_v42 = vadd.f32 %v1380_v58, %v1379_v11 }
 0x1e4   :  { %1112 = vmatpush.msra.mxu2 %v2139_v40  ;;  %1084 = vmatpush.msrb.mxu3 %v1083_v13  ;;  %v1382_v13 = vrot.slane %v1381_v42, 2 }
 0x1e6   :  { %1115 = vmatpush.msra.mxu2 %v2148_v48  ;;  %1090 = vmatpush.msrb.mxu3 %v1089_v14  ;;  %v1416_v14 = vrot.slane %v1415_v30, 4  ;;  %v1383_v28 = vadd.f32 %v1382_v13, %v1381_v42 }
 0x1e7   :  { %1547 = vmatmul.msk.f32.vlgmr.msrb.gmra.mxu3 %vm81_vm9, %v1811_v33 }
 0x1e8   :  { %1118 = vmatpush.msra.mxu2 %v2158_v41  ;;  %1143 = vmatpush.msra.mxu3 %v2141_v37 }
 0x1ea   :  { %1121 = vmatpush.msra.mxu2 %v2166_v43  ;;  %1145 = vmatpush.msra.mxu3 %v2127_v7 }
 0x1ec   :  { %1124 = vmatpush.msra.mxu2 %v2175_v52  ;;  %1147 = vmatpush.msra.mxu3 %v2129_v25 }
 0x1ee   :  { %1127 = vmatpush.msra.mxu2 %v2183_v62  ;;  %1149 = vmatpush.msra.mxu3 %v2131_v15 }
 0x1ef   :  { %1130 = vmatmul.f32.vlgmr.msra.gmra.mxu2 %v1825_v44  ;;  %v1296_v44 = vpop.xlane.xlu2 %1295 }
 0x1f0   :  { %1176 = vmatpush.msrb.mxu2 %v1045_v54  ;;  %1151 = vmatpush.msra.mxu3 %v2136_v45  ;;  %vm1306_vm7 = vcmp.ge.f32.partialorder %v1296_v44, 2.0 }
 0x1f2   :  { %1180 = vmatpush.msrb.mxu2 %v1051_v39  ;;  %1153 = vmatpush.msra.mxu3 %v2145_v22 }
 0x1f4   :  { %1184 = vmatpush.msrb.mxu2 %v1057_v5  ;;  %1155 = vmatpush.msra.mxu3 %v2155_v50 }
 0x1f6   :  { %1188 = vmatpush.msrb.mxu2 %v1063_v57  ;;  %1157 = vmatpush.msra.mxu3 %v2163_v20 }
 0x1f7   :  { %1161 = vmatmul.f32.vlgmr.msra.gmra.mxu3 %v1842_v51  ;;  %v1299_v51 = vpop.xlane.xlu2 %1298 }
 0x1f8   :  { %1192 = vmatpush.msrb.mxu2 %v1069_v0  ;;  %1219 = vmatpush.msrb.mxu3 %v2141_v37  ;;  %vm1307_vm8 = vcmp.ge.f32.partialorder %v1299_v51, 2.0  ;;  %v1417_v51 = vadd.f32 %v1416_v14, %v1415_v30 }
 0x1f9   :  { %v1311_v19 = vsel %vm1307_vm8, %v2054_v59, 3e+38 }
 0x1fa   :  { %1196 = vmatpush.msrb.mxu2 %v1075_v6  ;;  %1221 = vmatpush.msrb.mxu3 %v2127_v7  ;;  %v1310_v7 = vsel %vm1306_vm7, %v2033_v47, 3e+38  ;;  %v1418_v46 = vrot.slane %v1417_v51, 2 }
 0x1fc   :  { %1200 = vmatpush.msrb.mxu2 %v1081_v27  ;;  %1223 = vmatpush.msrb.mxu3 %v2129_v25  ;;  %v1314_v25 = vmin.f32 %v1310_v7, %v1311_v19 }
 0x1fe   :  { %1204 = vmatpush.msrb.mxu2 %v1087_v38  ;;  %1225 = vmatpush.msrb.mxu3 %v2131_v15  ;;  %v1338_v15 = vadd.f32 %v1337_v53, %v1336_v32  ;;  %v1384_v53 = vrot.slane %v1383_v28, 1 }
 0x1ff   :  { %1548 = vmatmul.msk.f32.vlgmr.msrb.gmra.mxu2 %vm81_vm9, %v1811_v33  ;;  %v1392_v38 = vpop.xlane.xlu2 %1391 }
 0x200   :  { %1227 = vmatpush.msrb.mxu3 %v2136_v45  ;;  %v1339_v45 = vrot.slane %v1338_v15, 2  ;;  %v1393_v34 = vrot.slane %v1392_v38, 4 }
 0x202   :  { %1229 = vmatpush.msrb.mxu3 %v2145_v22  ;;  %v1340_v59 = vadd.f32 %v1339_v45, %v1338_v15  ;;  %v1394_v49 = vadd.f32 %v1393_v34, %v1392_v38 }
 0x204   :  { %1231 = vmatpush.msrb.mxu3 %v2155_v50  ;;  %v1341_v48 = vrot.slane %v1340_v59, 1  ;;  %v1395_v63 = vrot.slane %v1394_v49, 2 }
 0x206   :  { %1233 = vmatpush.msrb.mxu3 %v2163_v20  ;;  %v1342_v39 = vadd.f32 %v1341_v48, %v1340_v59  ;;  %v1396_v7 = vadd.f32 %v1395_v63, %v1394_v49 }
 0x207   :  { %1549 = vmatmul.msk.f32.vlgmr.msrb.gmra.mxu3 %vm81_vm9, %v1811_v33 }
 0x254   :  { %v1302_v24 = vpop.xlane.xlu0 %1301 }
 0x255   :  { %vm1308_vm11 = vcmp.ge.f32.partialorder %v1302_v24, 2.0 }
 0x256   :  { %v1312_v33 = vsel %vm1308_vm11, %v2029_v31, 3e+38 }
 0x257   :  { %v1315_v4 = vmin.f32 %v1312_v33, %v1313_v55  ;;  %v1397_v33 = vrot.slane %v1396_v7, 1 }
 0x259   :  { %v1316_v23 = vmin.f32 %v1314_v25, %v1315_v4  ;;  %v1398_v45 = vadd.f32 %v1397_v33, %v1396_v7 }
 0x25b   :  { %v1317_v21 = vrot.slane %v1316_v23, 4 }
 0x25d   :  { %v1318_v40 = vmin.f32 %v1316_v23, %v1317_v21  ;;  %v1419_v23 = vadd.f32 %v1418_v46, %v1417_v51  ;;  %v1385_v21 = vadd.f32 %v1384_v53, %v1383_v28 }
 0x25f   :  { %v1319_v37 = vrot.slane %v1318_v40, 2 }
 0x261   :  { %v1320_v36 = vmin.f32 %v1318_v40, %v1319_v37  ;;  %v1420_v37 = vrot.slane %v1419_v23, 1 }
 0x262   :  { %v1032_v18 = vpop.f32.mrf.mxu2 }
 0x263   :  { %v1321_v29 = vrot.slane %v1320_v36, 1  ;;  %v1421_v59 = vadd.f32 %v1420_v37, %v1419_v23 }
 0x265   :  { %v1322_v16 = vmin.f32 %v1320_v36, %v1321_v29 }
 0x267   :  { %1557 = vpush %v1322_v16 }
 0x268   :  { %1559 = vpush %v1342_v39 }
 0x26a   :  { %v1093_v9 = vpop.f32.mrf.mxu3 }
 0x26b   :  { %v1094_v22 = vadd.f32 %v1093_v9, %v1032_v18 }
 0x272   :  { %v1131_v47 = vpop.f32.mrf.mxu2 }
 0x273   :  { %v1132_v41 = vadd.f32 %v1131_v47, %v1094_v22 }
 0x27a   :  { %v1162_v50 = vpop.f32.mrf.mxu3 }
 0x27b   :  { %v1163_v54 = vadd.f32 %v1162_v50, %v1132_v41 }
 0x282   :  { %v1207_v31 = vpop.f32.mrf.mxu2 }
 0x283   :  { %v1208_v5 = vadd.f32 %v1207_v31, %v1163_v54 }
 0x28a   :  { %v1236_v20 = vpop.f32.mrf.mxu3 }
 0x28b   :  { %v1237_v43 = vadd.f32 %v1236_v20, %v1208_v5 }
 0x28d   :  { %v2244_v12 = vmul.f32 0.016949153, %v1237_v43 }
 0x28f   :  { %1585 = vrsqrt.f32 %v2244_v12  ;;  %vm1355_vm9 = vcmp.eq.f32.partialorder %v2244_v12, inf  ;;  %v1358_v17 = vand.u32 2147483648, %v2244_v12  ;;  %vm1357_vm12 = vcmp.eq.f32.partialorder %v2244_v12, 0.0 }
 0x290   :  { %v1240_v46 = vadd.f32 1e-08, %v2244_v12 }
 0x295   :  { %v1586_v8 = vpop.eup %1585 }
 0x296   :  { %v1349_v57 = vmul.f32 %v1586_v8, %v2244_v12 }
 0x298   :  { %v1350_v52 = vmul.f32 %v1586_v8, %v1349_v57  ;;  %s1558_s2 = spop %1557 }
 0x299   :  { %s1560_s26 = spop %1559  ;;  %s1324_s27 = ssub.f32 0.0, %s1558_s2 }
 0x29a   :  { %v1351_v61 = vmul.f32 0.5, %v1350_v52  ;;  %s1344_s28 = smul.f32 0.03125, %s1560_s26 }
 0x29b   :  { %s1554_s29 = sadd.f32 -0.02, %s1324_s27 }
 0x29c   :  { %v1352_v60 = vsub.f32 1.5, %v1351_v61  ;;  %s1555_s30 = sadd.f32 -0.01, %s1344_s28 }
 0x29d   :  { %s1326_s5 = smax.f32 %s1679_s4, %s1554_s29 }
 0x29e   :  { %v1353_v0 = vmul.f32 %v1586_v8, %v1352_v60  ;;  %s1346_s6 = smax.f32 %s1679_s4, %s1555_s30  ;;  %s1327_s7 = smul.f32 10.0, %s1326_s5 }
 0x29f   :  { %s1347_s8 = smul.f32 15.0, %s1346_s6 }
 0x2a0   :  { %v1354_v62 = vmul.f32 %v1353_v0, %v2244_v12  ;;  %v1488_v22 = vstv %s1327_s7 }
 0x2a1   :  { %s1374_s10 = sadd.f32 %s1347_s8, %s1327_s7  ;;  %v1491_v29 = vstv %s1347_s8  ;;  %v1489_v16 = vsel %vm1487_vm14, %v1488_v22, 0.0  ;;  %vm1508_vm14 = vcmp.eq.s32.totalorder %v1709_v2, 6 }
 0x2a2   :  { %v1356_v26 = vsel %vm1355_vm9, %v2244_v12, %v1354_v62  ;;  %v1492_v39 = vsel %vm1490_vm15, %v1491_v29, 0.0  ;;  %vm1510_vm15 = vcmp.eq.s32.totalorder %v1709_v2, 7 }
 0x2a3   :  { %v1359_v6 = vsel %vm1357_vm12, %v1358_v17, %v1356_v26  ;;  %v1493_v54 = vadd.f32 %v1492_v39, %v1489_v16  ;;  %vm1501_vm12 = vcmp.eq.s32.totalorder %v1709_v2, 4 }
 0x2a4   :  { %v1556_v10 = vadd.f32 -0.009449112, %v1359_v6 }
 0x2a6   :  { %v1361_v3 = vmax.f32 %v1556_v10, 0.0 }
 0x2a8   :  { %v1363_v27 = vsel %vm1362_vm13, %v1361_v3, 0.0  ;;  %vm1504_vm13 = vcmp.eq.s32.totalorder %v1709_v2, 5 }
 0x2a9   :  { %1364 = vadd.xlane.f32.xlu0 %v1363_v27 }
 0x2b1   :  { %1401 = vadd.xlane.f32.xlu0 %v1400_v35 }
 0x31c   :  { %v1365_v56 = vpop.xlane.xlu0 %1364 }
 0x31d   :  { %v1366_v32 = vrot.slane %v1365_v56, 4 }
 0x31f   :  { %v1367_v44 = vadd.f32 %v1366_v32, %v1365_v56 }
 0x321   :  { %v1368_v19 = vrot.slane %v1367_v44, 2 }
 0x323   :  { %v1369_v55 = vadd.f32 %v1368_v19, %v1367_v44 }
 0x324   :  { %v1402_v24 = vpop.xlane.xlu0 %1401 }
 0x325   :  { %v1403_v25 = vrot.slane %v1402_v24, 4  ;;  %v1370_v18 = vrot.slane %v1369_v55, 1 }
 0x327   :  { %v1404_v4 = vadd.f32 %v1403_v25, %v1402_v24  ;;  %v1371_v15 = vadd.f32 %v1370_v18, %v1369_v55 }
 0x329   :  { %v1405_v9 = vrot.slane %v1404_v4, 2  ;;  %1561 = vpush %v1371_v15 }
 0x32a   :  { %1563 = vpush %v1385_v21 }
 0x32b   :  { %v1406_v40 = vadd.f32 %v1405_v9, %v1404_v4  ;;  %1565 = vpush %v1398_v45 }
 0x32d   :  { %v1407_v47 = vrot.slane %v1406_v40, 1 }
 0x32f   :  { %v1408_v36 = vadd.f32 %v1407_v47, %v1406_v40 }
 0x331   :  { %1567 = vpush %v1408_v36 }
 0x332   :  { %1569 = vpush %v1421_v59  ;;  %v1251_v59 = vand.u32 2147483648, %v1240_v46 }
 0x35a   :  { %s1562_s9 = spop %1561 }
 0x35b   :  { %s1373_s11 = smul.f32 0.15625, %s1562_s9  ;;  %s1564_s12 = spop %1563 }
 0x35c   :  { %s1566_s13 = spop %1565 }
 0x35d   :  { %s2259_s14 = sadd.f32 %s1374_s10, %s1373_s11  ;;  %v1495_v48 = vstv %s1373_s11  ;;  %s1423_s15 = smul.f32 0.00026041668, %s1566_s13 }
 0x35e   :  { %s1429_s16 = ssub.f32 %s1564_s12, %s1566_s13  ;;  %v1496_v41 = vsel %vm1494_vm2, %v1495_v48, 0.0  ;;  %vm1248_vm2 = vcmp.eq.f32.partialorder %v1240_v46, inf  ;;  %s1680_s10 = smov [#allocation7]  }
 0x35f   :  { %v1498_v50 = vstv %s2259_s14  ;;  %s1424_s17 = smul.f32 3840.0, %s1423_s15  ;;  %s1528_s11 = sshll.u32 %s1680_s10, 4  ;;  %s1529_s11 = int_to_ptr.vmem [resolvable:$true] %s1528_s11 }
 0x360   :  { %v1499_v31 = vsel %vm1497_vm3, %v1498_v50, 0.0  ;;  %s1430_s18 = smul.f32 0.00022977941, %s1429_s16  ;;  %vm1250_vm3 = vcmp.eq.f32.partialorder %v1240_v46, 0.0  ;;  %v1519_v50 = vperm.slane %v2244_v12, 0 }
 0x361   :  { %v1500_v5 = vadd.f32 %v1499_v31, %v1496_v41  ;;  %s1425_s19 = smul.f32 %s1424_s17, %s1423_s15 }
 0x362   :  { %s1432_s20 = smul.f32 4352.0, %s1430_s18  ;;  %s1568_s21 = spop %1567 }
 0x363   :  { %v2264_v20 = vadd.f32 %v1500_v5, %v1493_v54  ;;  %s1570_s22 = spop %1569 }
 0x364   :  { %s1426_s23 = ssub.f32 %s1570_s22, %s1425_s19  ;;  %s1433_s0 = smul.f32 %s1432_s20, %s1430_s18 }
 0x365   :  { %s1431_s1 = ssub.f32 %s1568_s21, %s1570_s22 }
 0x366   :  { %s1427_s24 = smax.f32 %s1679_s4, %s1426_s23 }
 0x367   :  { %s1428_s25 = smul.f32 0.0002604845, %s1427_s24  ;;  %s1434_s2 = ssub.f32 %s1431_s1, %s1433_s0 }
 0x369   :  { %s1435_s26 = smax.f32 %s1679_s4, %s1434_s2  ;;  %v1437_v43 = vstv %s1428_s25 }
 0x36a   :  { %s1436_s27 = smul.f32 0.00022983222, %s1435_s26  ;;  %1587 = vrsqrt.f32 %v1437_v43  ;;  %vm1445_vm4 = vcmp.eq.f32.partialorder %v1437_v43, inf  ;;  %v1448_v35 = vand.u32 2147483648, %v1437_v43  ;;  %vm1447_vm5 = vcmp.eq.f32.partialorder %v1437_v43, 0.0 }
 0x36c   :  { %v1451_v8 = vstv %s1436_s27 }
 0x36d   :  { %1589 = vrsqrt.f32 %v1451_v8  ;;  %vm1459_vm6 = vcmp.eq.f32.partialorder %v1451_v8, inf  ;;  %v1462_v42 = vand.u32 2147483648, %v1451_v8  ;;  %vm1461_vm7 = vcmp.eq.f32.partialorder %v1451_v8, 0.0 }
 0x370   :  { %v1588_v57 = vpop.eup %1587 }
 0x371   :  { %v1439_v52 = vmul.f32 %v1588_v57, %v1437_v43 }
 0x373   :  { %v1590_v61 = vpop.eup %1589  ;;  %v1440_v60 = vmul.f32 %v1588_v57, %v1439_v52 }
 0x374   :  { %v1453_v0 = vmul.f32 %v1590_v61, %v1451_v8 }
 0x375   :  { %v1441_v62 = vmul.f32 0.5, %v1440_v60 }
 0x376   :  { %v1454_v17 = vmul.f32 %v1590_v61, %v1453_v0 }
 0x377   :  { %v1442_v26 = vsub.f32 1.5, %v1441_v62 }
 0x378   :  { %v1455_v6 = vmul.f32 0.5, %v1454_v17 }
 0x379   :  { %v1443_v10 = vmul.f32 %v1588_v57, %v1442_v26 }
 0x37a   :  { %v1456_v3 = vsub.f32 1.5, %v1455_v6 }
 0x37b   :  { %v1444_v27 = vmul.f32 %v1443_v10, %v1437_v43 }
 0x37c   :  { %v1457_v11 = vmul.f32 %v1590_v61, %v1456_v3 }
 0x37d   :  { %v1446_v38 = vsel %vm1445_vm4, %v1437_v43, %v1444_v27  ;;  %vm1521_vm4 = vcmask 256000  }
 0x37e   :  { %v1449_v58 = vsel %vm1447_vm5, %v1448_v35, %v1446_v38  ;;  %v1458_v34 = vmul.f32 %v1457_v11, %v1451_v8 }
 0x37f   :  { %1571 = vpush %v1449_v58 }
 0x380   :  { %v1460_v49 = vsel %vm1459_vm6, %v1451_v8, %v1458_v34 }
 0x381   :  { %v1463_v30 = vsel %vm1461_vm7, %v1462_v42, %v1460_v49 }
 0x382   :  { %1573 = vpush %v1463_v30 }
 0x3b0   :  { %s2268_s28 = spop %1571 }
 0x3b3   :  { %s1574_s29 = spop %1573 }
 0x3b4   :  { %s1467_s30 = sadd.f32 1e-08, %s1574_s29 }
 0x3b5   :  { %s1465_s4 = ssub.f32 %s2268_s28, %s1574_s29 }
 0x3b6   :  { %v1468_v13 = vstv %s1467_s30 }
 0x3b7   :  { %1591 = vrcp.f32 %v1468_v13  ;;  %v1480_v32 = vand.u32 2147483648, %v1468_v13  ;;  %v1478_v51 = vand.u32 2147483647, %v1468_v13  ;;  %vm1474_vm10 = vweird.f32 %v1468_v13  ;;  %s1466_s5 = sand.u32 2147483647, %s1465_s4 }
 0x3b8   :  { %1593 = vrsqrt.f32 %v1240_v46 }
 0x3b9   :  { %v1481_v7 = vor.u32 1.1754944e-38, %v1480_v32  ;;  %vm1479_vm9 = vcmp.eq.f32.partialorder %v1478_v51, 8.507059e+37 }
 0x3bd   :  { %v1592_v14 = vpop.eup %1591 }
 0x3be   :  { %v1470_v56 = vmul.f32 %v1592_v14, %v1468_v13  ;;  %vm1475_vm8 = vweird.f32 %v1592_v14  ;;  %v1594_v24 = vpop.eup %1593 }
 0x3bf   :  { %vm1476_vm11 = vmor %vm1474_vm10, %vm1475_vm8  ;;  %v1242_v53 = vmul.f32 %v1594_v24, %v1240_v46 }
 0x3c0   :  { %v1471_v63 = vsub.f32 1.0, %v1470_v56 }
 0x3c1   :  { %v1243_v25 = vmul.f32 %v1594_v24, %v1242_v53 }
 0x3c2   :  { %v1472_v44 = vmul.f32 %v1592_v14, %v1471_v63 }
 0x3c3   :  { %v1244_v18 = vmul.f32 0.5, %v1243_v25 }
 0x3c4   :  { %v1473_v28 = vadd.f32 %v1592_v14, %v1472_v44 }
 0x3c5   :  { %v1245_v33 = vsub.f32 1.5, %v1244_v18 }
 0x3c6   :  { %v1477_v19 = vsel %vm1476_vm11, %v1592_v14, %v1473_v28 }
 0x3c7   :  { %v1482_v55 = vsel %vm1479_vm9, %v1481_v7, %v1477_v19  ;;  %v1246_v4 = vmul.f32 %v1594_v24, %v1245_v33 }
 0x3c8   :  { %1575 = vpush %v1482_v55 }
 0x3c9   :  { %v1247_v15 = vmul.f32 %v1246_v4, %v1240_v46 }
 0x3cb   :  { %v1249_v40 = vsel %vm1248_vm2, %v1240_v46, %v1247_v15 }
 0x3cc   :  { %v1252_v48 = vsel %vm1250_vm3, %v1251_v59, %v1249_v40 }
 0x3cd   :  { %v1517_v39 = vperm.slane %v1252_v48, 0 }
 0x3f9   :  { %s1576_s6 = spop %1575 }
 0x3fa   :  { %s1484_s7 = smul.f32 %s1576_s6, %s1466_s5 }
 0x3fc   :  { %s1485_s8 = smul.f32 0.1, %s1484_s7  ;;  %v1505_v21 = vstv %s1484_s7 }
 0x3fd   :  { %v1506_v37 = vsel %vm1504_vm13, %v1505_v21, 0.0 }
 0x3fe   :  { %s1486_s9 = sadd.f32 %s1485_s8, %s2259_s14  ;;  %v1502_v23 = vstv %s1485_s8  ;;  %s1530_s14 = sshll.u32 %s2289_s3, 4  ;;  %s1531_s14 = int_to_ptr.hbm [resolvable:$true] %s1530_s14 }
 0x3ff   :  { %v1503_v9 = vsel %vm1501_vm12, %v1502_v23, 0.0  ;;  %v1509_v47 = vsel %vm1508_vm14, %v1502_v23, 0.0 }
 0x400   :  { %v1511_v45 = vstv %s1486_s9  ;;  %v1507_v22 = vadd.f32 %v1506_v37, %v1503_v9 }
 0x401   :  { %v1512_v36 = vsel %vm1510_vm15, %v1511_v45, 0.0 }
 0x402   :  { %v1513_v29 = vadd.f32 %v1512_v36, %v1509_v47 }
 0x404   :  { %v1515_v16 = vadd.f32 %v1513_v29, %v1507_v22 }
 0x406   :  { %v1516_v2 = vadd.f32 %v1515_v16, %v2264_v20 }
 0x408   :  { %v1518_v41 = vsel %vm64_vm1, %v1517_v39, %v1516_v2 }
 0x409   :  { %v1520_v31 = vsel %vm63_vm0, %v1519_v50, %v1518_v41 }
 0x40a   :  { %1522 = vst.msk [vmem:[#allocation7] sm:$0x7] %vm1521_vm4, %v1520_v31 }
 0x40b   :  { %1533 = dma.vmem_to_hbm [thread:$0]  %s1529_s11, 64, %s1531_s14, [#allocation4]  }
 0x40c   :  { %1672 = dma.done.wait [#allocation4], 64  }
 0x40d   :  { %1673 = vsyncadd [#allocation4], 4294967232 }
 0x40e   :  { %1538 = vsyncpa [#allocation3], 1 }
 0x40f   :  { %1539 = vsyncpa [#allocation6], 1 }
 0x410   :  { %1540 = vsyncpa [#allocation4], 1 }

</bundles_post_ra>
